<compile_context>
chip_gen: v5e
topology: v5e:2x2
jax: 0.10.0
libtpu: 0.0.40
codegen_flags: <defaults>
</compile_context>

<pallas_src>
import math
import functools

import jax
import jax.numpy as jnp
from jax.experimental import pallas as pl
from jax.experimental.pallas import tpu as pltpu


# ----------------------------------------------------------------------------
# Generation-aware VMEM sizing
# ----------------------------------------------------------------------------
def _vmem_sizes():
    cap = None
    try:
        info = pltpu.get_tpu_info()
        cap = getattr(info, "vmem_capacity_bytes", None)
    except Exception:
        cap = None
    if cap is None:
        cap = 64 * 1024 * 1024                  # assume smallest (v7x) if unknown
    if cap >= 100 * 1024 * 1024:                # v5e / v6e: 128 MiB physical VMEM
        return 56 * 1024 * 1024, 100 * 1024 * 1024
    return 24 * 1024 * 1024, 44 * 1024 * 1024   # v7x: 64 MiB per TensorCore


_VMEM_BUDGET, _VMEM_LIMIT = _vmem_sizes()

_BM_MAX = 512                 # row tile
_BN_MAX = 256                 # col tile (256-wide MXU on v6e/v7x)


def _round_up(v, m):
    return (v + m - 1) // m * m


# ----------------------------------------------------------------------------
# Fused ( sum_s X_s @ W_s + bias ) -> activation Pallas kernels
# ----------------------------------------------------------------------------
def _make_fullk_kernel(n_seg, act):
    def kernel(*refs):
        xs = refs[:n_seg]
        ws = refs[n_seg:2 * n_seg]
        ba_ref = refs[2 * n_seg]
        o_ref = refs[2 * n_seg + 1]
        y = jnp.dot(xs[0][...], ws[0][...], preferred_element_type=jnp.float32)
        for s in range(1, n_seg):
            y = y + jnp.dot(xs[s][...], ws[s][...],
                            preferred_element_type=jnp.float32)
        ba = ba_ref[...]                      # (2, bn) f32: [bias; alpha]
        y = y + ba[0:1, :]
        if act == 'prelu':
            y = jnp.where(y >= 0.0, y, ba[1:2, :] * y)
        elif act == 'sigmoid':
            y = 1.0 / (1.0 + jnp.exp(-y))
        o_ref[...] = y.astype(o_ref.dtype)
    return kernel


def _make_ktiled_kernel(act):
    def kernel(x_ref, w_ref, ba_ref, o_ref, acc_ref):
        k = pl.program_id(2)

        @pl.when(k == 0)
        def _():
            acc_ref[...] = jnp.zeros_like(acc_ref)

        acc_ref[...] += jnp.dot(x_ref[...], w_ref[...],
                                preferred_element_type=jnp.float32)

        @pl.when(k == pl.num_programs(2) - 1)
        def _():
            ba = ba_ref[...]
            y = acc_ref[...] + ba[0:1, :]
            if act == 'prelu':
                y = jnp.where(y >= 0.0, y, ba[1:2, :] * y)
            elif act == 'sigmoid':
                y = 1.0 / (1.0 + jnp.exp(-y))
            o_ref[...] = y.astype(o_ref.dtype)
    return kernel


@functools.lru_cache(maxsize=None)
def _build_fused_matmul(M, seg_ks, N, act, out_dtype_name):
    out_dtype = jnp.dtype(out_dtype_name)
    ob = out_dtype.itemsize
    n_seg = len(seg_ks)
    K = int(sum(seg_ks))
    assert N % 128 == 0, N    # weights are pre-padded to lane-dense N

    bn = N if N <= _BN_MAX else (256 if N % 256 == 0 else 128)
    bm = M if M <= _BM_MAX else _BM_MAX

    cost = pl.CostEstimate(
        flops=2 * M * K * N,
        transcendentals=(M * N if act == 'sigmoid' else 0),
        bytes_accessed=M * K * 2 + K * N * 2 + M * N * ob + 2 * N * 4)

    def fullk_bytes(bm_):
        return 2 * (bm_ * K * 2 + K * bn * 2 + bm_ * bn * ob + 2 * bn * 4)

    use_fullk = (fullk_bytes(bm) <= _VMEM_BUDGET) or (n_seg > 1)
    if n_seg > 1:
        while fullk_bytes(bm) > _VMEM_BUDGET and bm > 8:
            bm = max(8, _round_up(bm // 2, 8))

    # ---- preferred path: full K in one block (no k axis, no scratch) -------
    if use_fullk:
        gm, gn = pl.cdiv(M, bm), pl.cdiv(N, bn)
        # v7x: make sure the parallel grid has >= 2 steps so both TensorCores
        # get work (harmless elsewhere).
        if gm * gn == 1 and M >= 16:
            bm = _round_up(pl.cdiv(M, 2), 8)
            gm = pl.cdiv(M, bm)

        # Grid-axis order by operand residency: default (i outer, j inner)
        # keeps X resident (W re-read gm times); swapped keeps W resident
        # (X re-read gn times).  Pick the cheaper one.
        swap = (gn - 1) * M < (gm - 1) * N
        if swap:
            grid = (gn, gm)
            x_map = lambda j, i: (i, 0)
            w_map = lambda j, i: (0, j)
            o_map = lambda j, i: (i, j)
        else:
            grid = (gm, gn)
            x_map = lambda i, j: (i, 0)
            w_map = lambda i, j: (0, j)
            o_map = lambda i, j: (i, j)

        in_specs = ([pl.BlockSpec((bm, ks), x_map) for ks in seg_ks] +
                    [pl.BlockSpec((ks, bn), w_map) for ks in seg_ks] +
                    [pl.BlockSpec((2, bn), w_map)])

        call = pl.pallas_call(
            _make_fullk_kernel(n_seg, act),
            out_shape=jax.ShapeDtypeStruct((M, N), out_dtype),
            grid_spec=pltpu.PrefetchScalarGridSpec(
                num_scalar_prefetch=0,
                grid=grid,
                in_specs=in_specs,
                out_specs=pl.BlockSpec((bm, bn), o_map)),
            compiler_params=pltpu.CompilerParams(
                dimension_semantics=("parallel", "parallel"),
                vmem_limit_bytes=_VMEM_LIMIT),
            cost_estimate=cost,
        )
        return jax.jit(lambda *ops: call(*ops))

    # ---- large-K fallback (single segment): tile K --------------------------
    tk, pad_k = None, 0
    for cand in (4096, 2048, 1024, 512, 256, 128):
        need = (2 * (bm * cand * 2 + cand * bn * 2 + 2 * bn * 4)
                + 2 * bm * bn * ob + bm * bn * 4)
        if K % cand == 0 and need <= _VMEM_BUDGET:
            tk = cand
            break
    if tk is None:                       # K not tileable: pad (rare)
        tk = 128
        pad_k = _round_up(K, 128) - K
    Kp = K + pad_k
    gm, gn = pl.cdiv(M, bm), pl.cdiv(N, bn)

    call = pl.pallas_call(
        _make_ktiled_kernel(act),
        out_shape=jax.ShapeDtypeStruct((M, N), out_dtype),
        grid_spec=pltpu.PrefetchScalarGridSpec(
            num_scalar_prefetch=0,
            grid=(gm, gn, Kp // tk),
            in_specs=[
                pl.BlockSpec((bm, tk), lambda i, j, k: (i, k)),
                pl.BlockSpec((tk, bn), lambda i, j, k: (k, j)),
                pl.BlockSpec((2, bn), lambda i, j, k: (0, j)),
            ],
            out_specs=pl.BlockSpec((bm, bn), lambda i, j, k: (i, j)),
            scratch_shapes=[pltpu.VMEM((bm, bn), jnp.float32)]),
        compiler_params=pltpu.CompilerParams(
            dimension_semantics=("parallel", "parallel", "arbitrary"),
            vmem_limit_bytes=_VMEM_LIMIT),
        cost_estimate=cost,
    )

    def fn(x, w, ba):
        if pad_k:
            # TODO(synk): mask the K tail in-kernel instead of padding in HBM.
            x = jnp.pad(x, ((0, 0), (0, pad_k)))
            w = jnp.pad(w, ((0, pad_k), (0, 0)))
        return call(x, w, ba)

    return jax.jit(fn)


def fused_matmul(xs, ws, ba, act, out_dtype=jnp.bfloat16):
    """act( sum_s xs[s] @ ws[s] + bias ).
    xs[s]:(M,Ks) bf16, ws[s]:(Ks,N) bf16 (BN folded, N pre-padded to 128k),
    ba:(2,N) f32 rows = [bias, prelu_alpha]."""
    xs = [x.astype(jnp.bfloat16) for x in xs]
    M = int(xs[0].shape[0])
    seg_ks = tuple(int(x.shape[1]) for x in xs)
    N = int(ws[0].shape[1])
    fn = _build_fused_matmul(M, seg_ks, N, act, jnp.dtype(out_dtype).name)
    return fn(*xs, *ws, ba)


# ----------------------------------------------------------------------------
# Convolution = im2col (bf16 glue) + fused Pallas matmul
# ----------------------------------------------------------------------------
def _extract_patches(x, kh, kw, stride, dilation, padding):
    n, h, w, c = x.shape
    sh, sw = stride
    dh, dw = dilation
    ph, pw = padding
    xp = jnp.pad(x, ((0, 0), (ph, ph), (pw, pw), (0, 0)))
    hp, wp = h + 2 * ph, w + 2 * pw
    ho = (hp - dh * (kh - 1) - 1) // sh + 1
    wo = (wp - dw * (kw - 1) - 1) // sw + 1
    cols = []
    for i in range(kh):
        for j in range(kw):
            h0, w0 = i * dh, j * dw
            cols.append(xp[:, h0:h0 + sh * (ho - 1) + 1:sh,
                           w0:w0 + sw * (wo - 1) + 1:sw, :])
    return jnp.concatenate(cols, axis=-1), ho, wo


def conv2d(p, x, stride=(1, 1), padding=(0, 0), dilation=(1, 1)):
    # TODO(synk): k>1 convs still materialize an im2col patch matrix in HBM.
    kh, kw, cin, cout = p['kh'], p['kw'], p['cin'], p['cout']
    x = x.astype(jnp.bfloat16)
    n = x.shape[0]
    if kh == 1 and kw == 1 and stride == (1, 1) and padding == (0, 0):
        ho, wo = x.shape[1], x.shape[2]
        xmat = x.reshape(n * ho * wo, cin)
    else:
        cols, ho, wo = _extract_patches(x, kh, kw, stride, dilation, padding)
        xmat = cols.reshape(n * ho * wo, kh * kw * cin)
    y = fused_matmul([xmat], [p['w']], p['ba'], p['act'])
    if p['w'].shape[1] != cout:
        y = y[:, :cout]
    return y.reshape(n, ho, wo, cout)


def conv1x1_multi(p, xs):
    """1x1 conv on channel-concat(xs) without materializing the concat."""
    n, h, w = xs[0].shape[:3]
    m = n * h * w
    xmats = [x.astype(jnp.bfloat16).reshape(m, x.shape[-1]) for x in xs]
    y = fused_matmul(xmats, list(p['ws']), p['ba'], p['act'])
    cout = p['cout']
    if p['w'].shape[1] != cout:
        y = y[:, :cout]
    return y.reshape(n, h, w, cout)


def apply_linear(p, x):
    y = fused_matmul([x], [p['w']], p['ba'], p['act'])
    if p['w'].shape[1] != p['cout']:
        y = y[:, :p['cout']]
    return y


# ----------------------------------------------------------------------------
# Glue ops (pure JAX): pooling, bilinear resize (align_corners=True)
# ----------------------------------------------------------------------------
def max_pool_3x3_s2_p1(x):
    n, h, w, c = x.shape
    xp = jnp.pad(x, ((0, 0), (1, 1), (1, 1), (0, 0)),
                 constant_values=-jnp.inf)
    ho = (h + 2 - 3) // 2 + 1
    wo = (w + 2 - 3) // 2 + 1
    out = None
    for i in range(3):
        for j in range(3):
            v = xp[:, i:i + 2 * (ho - 1) + 1:2, j:j + 2 * (wo - 1) + 1:2, :]
            out = v if out is None else jnp.maximum(out, v)
    return out


def bilinear_resize_ac(x, out_h, out_w):
    """Bilinear resize with align_corners=True (matches F.interpolate)."""
    n, h, w, c = x.shape
    dtype = x.dtype
    ys = (jnp.arange(out_h, dtype=jnp.float32) *
          ((h - 1) / (out_h - 1) if out_h > 1 else 0.0))
    xs = (jnp.arange(out_w, dtype=jnp.float32) *
          ((w - 1) / (out_w - 1) if out_w > 1 else 0.0))
    y0 = jnp.clip(jnp.floor(ys).astype(jnp.int32), 0, h - 1)
    y1 = jnp.clip(y0 + 1, 0, h - 1)
    x0 = jnp.clip(jnp.floor(xs).astype(jnp.int32), 0, w - 1)
    x1 = jnp.clip(x0 + 1, 0, w - 1)
    wy = (ys - y0.astype(jnp.float32))[None, :, None, None]
    wx = (xs - x0.astype(jnp.float32))[None, None, :, None]
    r0 = x[:, y0]                       # gathers stay in the input dtype (bf16)
    r1 = x[:, y1]
    rows = r0 * (1.0 - wy) + r1 * wy    # lerp in f32
    out = rows[:, :, x0] * (1.0 - wx) + rows[:, :, x1] * wx
    return out.astype(dtype)


def up2(x):  # nn.UpsamplingBilinear2d(scale_factor=2) -> align_corners=True
    return bilinear_resize_ac(x, 2 * x.shape[1], 2 * x.shape[2])


# ----------------------------------------------------------------------------
# Deterministic parameter construction (BatchNorm folded, N pre-padded)
# ----------------------------------------------------------------------------
class ParamGen:
    def __init__(self, key):
        self.key = key

    def next(self, shape, mul=1.0):
        self.key, sub = jax.random.split(self.key)
        return jax.random.normal(sub, shape, jnp.float32) * mul


def _act_spec(act, cout):
    if act == 'prelu':
        return 'prelu', jnp.full((cout,), 0.25, jnp.float32)   # nn.PReLU() init
    if act == 'relu':
        return 'prelu', jnp.zeros((cout,), jnp.float32)
    if act == 'sigmoid':
        return 'sigmoid', jnp.zeros((cout,), jnp.float32)
    return 'linear', jnp.zeros((cout,), jnp.float32)


def make_conv(pg, cin, cout, kh, kw, act='prelu', bn=True):
    fan_in = kh * kw * cin
    w = pg.next((kh * kw * cin, cout), mul=1.0 / math.sqrt(fan_in))
    b = pg.next((cout,), mul=0.01)
    if bn:
        gamma = 1.0 + pg.next((cout,), mul=0.1)
        beta = pg.next((cout,), mul=0.01)
        mean = pg.next((cout,), mul=0.01)
        var = jnp.abs(1.0 + pg.next((cout,), mul=0.1))
        scale = gamma / jnp.sqrt(var + 1e-5)
        bias = (b - mean) * scale + beta
    else:
        scale = jnp.ones((cout,), jnp.float32)
        bias = b
    kact, alpha = _act_spec(act, cout)
    cout_p = _round_up(cout, 128)                 # lane-dense output columns
    w = (w * scale[None, :]).astype(jnp.bfloat16)  # fold BN scale into W
    w = jnp.pad(w, ((0, 0), (0, cout_p - cout)))
    ba = jnp.pad(jnp.stack([bias, alpha], 0),
                 ((0, 0), (0, cout_p - cout))).astype(jnp.float32)
    return {'w': w, 'ba': ba, 'kh': kh, 'kw': kw, 'cin': cin, 'cout': cout,
            'act': kact}


def make_conv1x1_multi(pg, cins, cout, act='prelu', bn=True):
    """1x1 conv over a channel-concat of inputs with sizes `cins`, stored as
    pre-split K segments so the concat never hits HBM."""
    p = make_conv(pg, int(sum(cins)), cout, 1, 1, act, bn)
    ws, off = [], 0
    for c in cins:
        ws.append(p['w'][off:off + c, :])
        off += c
    p['ws'] = tuple(ws)
    return p


def make_linear(pg, cin, cout, act='linear'):
    w = pg.next((cin, cout), mul=1.0 / math.sqrt(cin))
    b = pg.next((cout,), mul=0.01)
    kact, alpha = _act_spec(act, cout)
    cout_p = _round_up(cout, 128)
    w = jnp.pad(w.astype(jnp.bfloat16), ((0, 0), (0, cout_p - cout)))
    ba = jnp.pad(jnp.stack([b, alpha], 0),
                 ((0, 0), (0, cout_p - cout))).astype(jnp.float32)
    return {'w': w, 'ba': ba, 'cin': cin, 'cout': cout, 'act': kact}


# ----------------------------------------------------------------------------
# DCE_Module
# ----------------------------------------------------------------------------
def make_dce(pg, c):
    cs, cd = c // 4, c // 2
    p = {
        # four 1x1 channel reductions share the input x -> one wide matmul
        'cr_all': make_conv(pg, c, 4 * cs, 1, 1, 'prelu'),
        'local': make_conv(pg, c, c, 3, 3, 'prelu'),
        # 1x1 fusion over cat(p1..p4, local) -> concat-free K segments
        'fusion': make_conv1x1_multi(pg, (cs, cs, cs, cs, c), c, 'prelu'),
        'p1_d1': [make_conv(pg, cs, cs, 3, 1, 'prelu'),
                  make_conv(pg, cs, cs, 1, 3, 'prelu')],
        'p1_d2': [make_conv(pg, cs, cs, 1, 3, 'prelu'),
                  make_conv(pg, cs, cs, 3, 1, 'prelu')],
        'p1_fusion': make_conv1x1_multi(pg, (cs, cs), cs, 'prelu'),
        'p1_dc': make_conv(pg, cs, cs, 3, 3, 'prelu'),
    }
    for name, k in (('p2', 5), ('p3', 7), ('p4', 9)):
        p[name + '_d1'] = [make_conv(pg, cd, cs, k, 1, 'prelu'),
                           make_conv(pg, cs, cs, 1, k, 'prelu')]
        p[name + '_d2'] = [make_conv(pg, cd, cs, 1, k, 'prelu'),
                           make_conv(pg, cs, cs, k, 1, 'prelu')]
        p[name + '_fusion'] = make_conv1x1_multi(pg, (cs, cs), cs, 'prelu')
        p[name + '_dc'] = make_conv(pg, cs, cs, 3, 3, 'prelu')
    return p


def apply_dce(p, x):
    cs = p['cr_all']['cout'] // 4

    def branch(name, inp, k, dil):
        ph = ((k - 1) // 2, 0)
        pw = (0, (k - 1) // 2)
        d1 = conv2d(p[name + '_d1'][0], inp, padding=ph)
        d1 = conv2d(p[name + '_d1'][1], d1, padding=pw)
        d2 = conv2d(p[name + '_d2'][0], inp, padding=pw)
        d2 = conv2d(p[name + '_d2'][1], d2, padding=ph)
        f = conv1x1_multi(p[name + '_fusion'], [d1, d2])
        return conv2d(p[name + '_dc'], f, padding=(dil, dil),
                      dilation=(dil, dil))

    cr = conv2d(p['cr_all'], x)
    cr1, cr2, cr3, cr4 = (cr[..., i * cs:(i + 1) * cs] for i in range(4))

    p1 = branch('p1', cr1, 3, 3)
    p2 = branch('p2', jnp.concatenate([cr2, p1], -1), 5, 5)
    p3 = branch('p3', jnp.concatenate([cr3, p2], -1), 7, 7)
    p4 = branch('p4', jnp.concatenate([cr4, p3], -1), 9, 9)
    local = conv2d(p['local'], x, padding=(1, 1))
    return conv1x1_multi(p['fusion'], [p1, p2, p3, p4, local])


# ----------------------------------------------------------------------------
# CBAM / SE attention / SpatialAttention
# ----------------------------------------------------------------------------
# TODO(synk): CBAM / AttentionBlock / SpatialAttention definitions are not in
#             the provided source; standard channel+spatial attention blocks
#             are used here with the same call signatures.
def make_cbam(pg, c, ratio=16):
    hid = max(c // ratio, 8)
    return {'fc1': make_linear(pg, c, hid, 'relu'),
            'fc2': make_linear(pg, hid, c, 'linear'),
            'sconv': make_conv(pg, 2, 1, 7, 7, 'sigmoid', bn=False)}


def apply_cbam(p, x):
    avg = jnp.mean(x, axis=(1, 2))
    mx = jnp.max(x, axis=(1, 2))
    both = jnp.concatenate([avg, mx], axis=0)     # one batched MLP pass
    h = apply_linear(p['fc2'], apply_linear(p['fc1'], both))
    n = avg.shape[0]
    ca = jax.nn.sigmoid(h[:n] + h[n:])                            # (N, C)
    savg = jnp.mean(x, axis=-1, keepdims=True)
    smax = jnp.max(x, axis=-1, keepdims=True)
    sa = conv2d(p['sconv'], jnp.concatenate([savg, smax], -1),
                padding=(3, 3))                   # sigmoid fused in kernel
    return ca[:, None, None, :].astype(x.dtype) * sa              # (N,H,W,C)


def make_se(pg, c, ratio=16):
    hid = max(c // ratio, 4)
    return {'fc1': make_linear(pg, c, hid, 'relu'),
            'fc2': make_linear(pg, hid, c, 'sigmoid')}


def apply_se(p, x):
    g = jnp.mean(x, axis=(1, 2))
    s = apply_linear(p['fc2'], apply_linear(p['fc1'], g))  # sigmoid fused
    return x * s[:, None, None, :].astype(x.dtype)


def make_spatial_att(pg):
    return {'conv': make_conv(pg, 2, 1, 7, 7, 'sigmoid', bn=False)}


def apply_spatial_att(p, x):
    avg = jnp.mean(x, -1, keepdims=True)
    mx = jnp.max(x, -1, keepdims=True)
    return conv2d(p['conv'], jnp.concatenate([avg, mx], -1),
                  padding=(3, 3))                 # sigmoid fused in kernel


# ----------------------------------------------------------------------------
# RFB
# ----------------------------------------------------------------------------
def make_rfb(pg, cin, cout):
    def br(k):
        return [make_conv(pg, cin, cout, 1, 1, 'relu'),
                make_conv(pg, cout, cout, 1, k, 'relu'),
                make_conv(pg, cout, cout, k, 1, 'relu'),
                make_conv(pg, cout, cout, 3, 3, 'relu')]

    return {'cbam': make_cbam(pg, cin),
            'b0': make_conv(pg, cin, cout, 1, 1, 'linear', bn=False),
            'b1': br(3), 'b2': br(5), 'b3': br(7),
            # TODO(synk): conv3x3_bn_relu not in source; assumed 3x3/pad1+BN+ReLU
            'cat': make_conv(pg, 4 * cout, cout, 3, 3, 'relu')}


def apply_rfb(p, x):
    att = apply_cbam(p['cbam'], x)
    x = x * att
    x0 = conv2d(p['b0'], x)

    def br(bp, k, dil):
        h = conv2d(bp[0], x)
        h = conv2d(bp[1], h, padding=(0, (k - 1) // 2))
        h = conv2d(bp[2], h, padding=((k - 1) // 2, 0))
        return conv2d(bp[3], h, padding=(dil, dil), dilation=(dil, dil))

    x1 = br(p['b1'], 3, 3)
    x2 = br(p['b2'], 5, 5)
    x3 = br(p['b3'], 7, 7)
    xcat = jnp.concatenate([x0, x1, x2, x3], -1)
    return conv2d(p['cat'], xcat, padding=(1, 1))


# ----------------------------------------------------------------------------
# Encoder (stand-in for ResNet-50) and Decoder
# ----------------------------------------------------------------------------
# TODO(synk): ResNet() definition is not in the provided source; a small conv
#             stand-in producing the expected 4 feature maps with channels
#             (256, 512, 1024, 2048) at strides (4, 8, 16, 32) is used.
def make_encoder(pg):
    return {'stem': make_conv(pg, 3, 64, 7, 7, 'relu'),
            'l1': make_conv(pg, 64, 256, 3, 3, 'relu'),
            'l2': make_conv(pg, 256, 512, 3, 3, 'relu'),
            'l3': make_conv(pg, 512, 1024, 3, 3, 'relu'),
            'l4': make_conv(pg, 1024, 2048, 3, 3, 'relu')}


def apply_encoder(p, x):
    h = conv2d(p['stem'], x, stride=(2, 2), padding=(3, 3))
    h = max_pool_3x3_s2_p1(h)
    f1 = conv2d(p['l1'], h, padding=(1, 1))
    f2 = conv2d(p['l2'], f1, stride=(2, 2), padding=(1, 1))
    f3 = conv2d(p['l3'], f2, stride=(2, 2), padding=(1, 1))
    f4 = conv2d(p['l4'], f3, stride=(2, 2), padding=(1, 1))
    return [f1, f2, f3, f4]


def make_decoder(pg):
    sc = 64
    p = {'down1': make_rfb(pg, 256, sc), 'down2': make_rfb(pg, 512, sc),
         'down3': make_rfb(pg, 1024, sc), 'down4': make_rfb(pg, 2048, sc)}
    for i in range(1, 5):
        p['se%d' % i] = make_se(pg, sc)
        p['pe%d' % i] = make_spatial_att(pg)
        p['dce%d' % i] = make_dce(pg, sc)
        p['conv%d' % i] = make_conv(pg, sc, 1, 1, 1, 'linear', bn=False)
    # TODO(synk): conv3x3_bn_pRelu not in source; assumed 3x3/pad1+BN+PReLU
    for name in ('cr43', 'cr32', 'cr21'):
        p[name] = make_conv(pg, 2 * sc, sc, 3, 3, 'prelu')
    # cr10 is constructed in the PyTorch module but never used in forward.
    return p


def apply_decoder(p, fea, shape):
    fea1 = apply_rfb(p['down1'], fea[0])
    fea2 = apply_rfb(p['down2'], fea[1])
    fea3 = apply_rfb(p['down3'], fea[2])
    fea4 = apply_rfb(p['down4'], fea[3])

    se1 = apply_se(p['se1'], fea1)
    se2 = apply_se(p['se2'], fea2)
    se3 = apply_se(p['se3'], fea3)
    se4 = apply_se(p['se4'], fea4)

    dce4 = apply_dce(p['dce4'], se4)
    pe4_map = up2(apply_spatial_att(p['pe4'], dce4))
    pe3 = se3 * pe4_map
    up43 = up2(dce4)
    cr43 = conv2d(p['cr43'], jnp.concatenate([pe3, up43], -1), padding=(1, 1))

    dce3 = apply_dce(p['dce3'], cr43)
    pe3_map = up2(apply_spatial_att(p['pe3'], dce3))
    pe2 = se2 * pe3_map
    up32 = up2(dce3)
    cr32 = conv2d(p['cr32'], jnp.concatenate([pe2, up32], -1), padding=(1, 1))

    dce2 = apply_dce(p['dce2'], cr32)
    pe2_map = up2(apply_spatial_att(p['pe2'], dce2))
    pe1 = se1 * pe2_map
    up21 = up2(dce2)
    cr21 = conv2d(p['cr21'], jnp.concatenate([pe1, up21], -1), padding=(1, 1))

    dce1 = apply_dce(p['dce1'], cr21)

    h, w = shape
    o1 = bilinear_resize_ac(conv2d(p['conv1'], dce1), h, w)
    o2 = bilinear_resize_ac(conv2d(p['conv2'], dce2), h, w)
    o3 = bilinear_resize_ac(conv2d(p['conv3'], dce3), h, w)
    o4 = bilinear_resize_ac(conv2d(p['conv4'], dce4), h, w)
    return (o1.astype(jnp.float32), o2.astype(jnp.float32),
            o3.astype(jnp.float32), o4.astype(jnp.float32))


# ----------------------------------------------------------------------------
# PGN
# ----------------------------------------------------------------------------
def make_pgn(key):
    pg = ParamGen(key)
    return {'enc': make_encoder(pg), 'dec': make_decoder(pg)}


def pgn_forward(params, x, shape=None):
    """x: (N, H, W, 3) NHWC float. Returns 4 saliency maps (N, H, W, 1)."""
    x = x.astype(jnp.bfloat16)
    fea = apply_encoder(params['enc'], x)
    sh = (x.shape[1], x.shape[2]) if shape is None else shape
    return apply_decoder(params['dec'], fea, sh)


# ----------------------------------------------------------------------------
if __name__ == "__main__":
    key = jax.random.PRNGKey(0)
    pkey, xkey = jax.random.split(key)

    params = make_pgn(pkey)

    B, H, W = 2, 64, 64
    x = jax.random.normal(xkey, (B, H, W, 3), jnp.float32)

    outs = pgn_forward(params, x)
    outs = jax.block_until_ready(outs)

    assert len(outs) == 4
    for o in outs:
        assert o.shape == (B, H, W, 1), o.shape
        assert bool(jnp.all(jnp.isfinite(o)))

    print("KERNEL_OK")
</pallas_src>

<mosaic_0001>
module attributes {stable_mosaic.version = 11 : i64} {
  func.func @kernel(%arg0: i32, %arg1: i32, %arg2: memref<512x147xbf16, #tpu.memory_space<vmem>>, %arg3: memref<147x128xbf16, #tpu.memory_space<vmem>>, %arg4: memref<2x128xf32, #tpu.memory_space<vmem>>, %arg5: memref<512x128xbf16, #tpu.memory_space<vmem>>) attributes {dimension_semantics = [#tpu.dimension_semantics<parallel>, #tpu.dimension_semantics<parallel>], iteration_bounds = array<i64: 1, 4>, scalar_prefetch = 0 : i64, scratch_operands = 0 : i64, tpu.core_type = #tpu.core_type<tc>, window_params = [{transform_indices = @transform_0, window_bounds = array<i64: 512, 147>}, {transform_indices = @transform_1, window_bounds = array<i64: 147, 128>}, {transform_indices = @transform_2, window_bounds = array<i64: 2, 128>}, {transform_indices = @transform_3, window_bounds = array<i64: 512, 128>}]} {
    %c0 = arith.constant 0 : index
    %c0_0 = arith.constant 0 : index
    %0 = vector.load %arg2[%c0, %c0_0] : memref<512x147xbf16, #tpu.memory_space<vmem>>, vector<512x147xbf16>
    %c0_1 = arith.constant 0 : index
    %c0_2 = arith.constant 0 : index
    %1 = vector.load %arg3[%c0_1, %c0_2] : memref<147x128xbf16, #tpu.memory_space<vmem>>, vector<147x128xbf16>
    %cst = arith.constant dense<0.000000e+00> : vector<512x128xf32>
    %2 = tpu.matmul %0, %1, %cst {dimension_numbers = #tpu.dot_dimension_numbers<[1], [0], [0], [1], [0, 0, 1, 1], [], []>} : vector<512x147xbf16>, vector<147x128xbf16>, vector<512x128xf32> -> vector<512x128xf32>
    %c0_3 = arith.constant 0 : index
    %c0_4 = arith.constant 0 : index
    %3 = vector.load %arg4[%c0_3, %c0_4] : memref<2x128xf32, #tpu.memory_space<vmem>>, vector<2x128xf32>
    %4 = vector.extract_strided_slice %3 {offsets = [0, 0], sizes = [1, 128], strides = [1, 1]} : vector<2x128xf32> to vector<1x128xf32>
    %5 = vector.broadcast %4 : vector<1x128xf32> to vector<512x128xf32>
    %6 = arith.addf %2, %5 : vector<512x128xf32>
    %cst_5 = arith.constant 0.000000e+00 : f32
    %7 = vector.broadcast %cst_5 : f32 to vector<512x128xf32>
    %8 = arith.cmpf oge, %6, %7 : vector<512x128xf32>
    %9 = vector.extract_strided_slice %3 {offsets = [1, 0], sizes = [1, 128], strides = [1, 1]} : vector<2x128xf32> to vector<1x128xf32>
    %10 = vector.broadcast %9 : vector<1x128xf32> to vector<512x128xf32>
    %11 = arith.mulf %10, %6 : vector<512x128xf32>
    %12 = arith.select %8, %6, %11 : vector<512x128xi1>, vector<512x128xf32>
    %13 = arith.truncf %12 : vector<512x128xf32> to vector<512x128xbf16>
    %c0_6 = arith.constant 0 : index
    %c0_7 = arith.constant 0 : index
    %14 = vector.load %arg5[%c0_6, %c0_7] : memref<512x128xbf16, #tpu.memory_space<vmem>>, vector<512x128xbf16>
    tpu.vector_store %arg5[%c0_6, %c0_7], %13 {strides = array<i32>} : memref<512x128xbf16, #tpu.memory_space<vmem>>, vector<512x128xbf16>,
    return
  }
  func.func @transform_0(%arg0: i32, %arg1: i32) -> (i32, i32) {
    %c0_i32 = arith.constant 0 : i32
    %c0_i32_0 = arith.constant 0 : i32
    return %arg1, %c0_i32 : i32, i32
  }
  func.func @transform_1(%arg0: i32, %arg1: i32) -> (i32, i32) {
    %c0_i32 = arith.constant 0 : i32
    %c0_i32_0 = arith.constant 0 : i32
    return %c0_i32, %arg0 : i32, i32
  }
  func.func @transform_2(%arg0: i32, %arg1: i32) -> (i32, i32) {
    %c0_i32 = arith.constant 0 : i32
    %c0_i32_0 = arith.constant 0 : i32
    return %c0_i32, %arg0 : i32, i32
  }
  func.func @transform_3(%arg0: i32, %arg1: i32) -> (i32, i32) {
    %c0_i32 = arith.constant 0 : i32
    return %arg1, %arg0 : i32, i32
  }
}

</mosaic_0001>

<bundles_post_ra>
// kernel: _lambda_.1
= control target key start
LH: loop header
LB: loop body
LE: loop exit
PB: predicated region body
PF: predicated region fallthrough
CT: control target
= control target key end

     0   :  { %8 = vsyncpa [#allocation3], 0  ;;  %s2844_s0 = inlined_call_operand.vmem [shape: bf16[2048,147], index: 0, kind: input, shape index: {}]   ;;  %s2845_s1 = inlined_call_operand.vmem [shape: bf16[147,128], index: 1, kind: input, shape index: {}]   ;;  %s2846_s2 = inlined_call_operand.vmem [shape: f32[2,128], index: 2, kind: input, shape index: {}]   ;;  %s2847_s3 = inlined_call_operand.hbm [shape: bf16[2048,128], index: 3, kind: output, shape index: {}]  }
   0x1   :  { %10 = vsyncpa [#allocation3 + $0x1], 0  ;;  %s2313_s12 = smov 0   ;;  %s2315_s13 = smov 0  }
   0x2   :  { %s2317_s14 = smov 0   ;;  %s2319_s15 = smov 0  }
   0x3   :  { %s2321_s16 = smov 0   ;;  %s2323_s17 = smov 0  }
   0x4 LB: > { %s1536_s18 = sadd.s32 4294967295, %s2288_s17   ;;  %s1537_s19 = sadd.s32 4294967294, %s2288_s17   ;;  %s2288_s17 = sphi %s2323_s17, %s16_s17   ;;  %s2284_s16 = sphi %s2321_s16, %s2854_s16   ;;  %s2280_s15 = sphi %s2319_s15, %s2853_s15   ;;  %s2276_s14 = sphi %s2317_s14, %s2852_s14   ;;  %s2272_s13 = sphi %s2315_s13, %s2851_s13   ;;  %s2268_s12 = sphi %s2313_s12, %s2850_s12  }
   0x5   : > { %s25_s20 = sadd.s32 1, %s2284_s16  ;;  %s115_s21 = sadd.s32 1, %s2276_s14 }
   0x6   : > { %p26_p0 = scmp.ge.s32.totalorder %s25_s20, 4  ;;  %p125_p1 = scmp.ne.s32.totalorder %s2276_s14, %s2272_s13 }
   0x7   : > { %p126_p2 = scmp.eq.s32.totalorder %s1536_s18, 3  ;;  %p131_p3 = scmp.ne.s32.totalorder %s2272_s13, %s2268_s12 }
   0x8   : > { %s2856_s20 = smov (%p26_p0, %s25_s20), 0  ;;  %p132_p5 = scmp.eq.s32.totalorder %s1537_s19, 3 }
   0x9   : > { %p2353_p4 = por %p126_p2, %p125_p1  ;;  %s110_s23 = ssub.s32 %s2284_s16, %s2856_s20 }
   0xa   : > { %p1542_p6 = scmp.ge.s32.totalorder %s2288_s17, 1  ;;  %p113_p7 = scmp.eq.s32.totalorder %s110_s23, 0 }
   0xb   : > { %p2360_p8 = por %p132_p5, %p131_p3  ;;  %p174_p9 = scmp.lt.s32.totalorder %s2288_s17, 5 }
   0xc   : > { %s2366_s25 = scalar_select %p113_p7, %s2276_s14, %s115_s21  }
   0xd   : > { %p175_p10 = pnand %p1542_p6, %p174_p9 }
   0xe   : > { %s1544_s30 = sshll.u32 (!%p175_p10), %s2280_s15, 6  ;;  %s204_s9 = sand.u32 (!%p175_p10), 1, %s2272_s13  }
   0xf   : > { %178 = sbr.rel (%p175_p10) target bundleno = 445 (0x1bd), region = 32  ;;  %p208_p11 = scmp.lt.s32.totalorder (!%p175_p10), %s1544_s30, 255 }
  0x10   : > { %s1543_s10 = sshll.u32 (!%p175_p10), %s204_s9, 8  ;;  %s1950_s18 = sshll.u32 (!%p175_p10), %s2280_s15, 8 }
  0x11   : > { %s2538_s11 = scalar_lea.vmem (!%p175_p10), [#allocation2], %s1543_s10  ;;  %s1430_s23 = scalar_lea.hbm (!%p175_p10), %s2847_s3, %s1950_s18 }
  0x12   : > { %s1431_s15 = sshll.u32 (!%p175_p10), %s2538_s11, 4  ;;  %s1433_s26 = sshll.u32 (!%p175_p10), %s1430_s23, 4  ;;  %s1432_s15 = int_to_ptr.vmem [resolvable:$true] %s1431_s15  ;;  %s1434_s26 = int_to_ptr.hbm [resolvable:$true] %s1433_s26 }
  0x13   : > { %s1418_s27 = scalar_lea.sflag (!%p175_p10), [#allocation3], %s204_s9  ;;  %s2224_s28 = sshra.s32 (!%p175_p10), %s1434_s26, 4  ;;  %s2225_s28 = int_to_ptr.hbm [resolvable:$true] %s2224_s28 }
  0x14   : > { %v1948_v0 = vld [vmem:[%s2845_s1 + $0x38] sm:$0xff]  ;;  %v306_v1 = vld [vmem:[%s2845_s1 + $0x48] sm:$0x3]  ;;  %vm751_vm0 = vcmask 1040384   ;;  %vm752_vm1 = vcmask 1041408   ;;  %v1947_v3 = vld [vmem:[%s2845_s1 + $0x30] sm:$0xff]  ;;  %p2231_p1 = scmp.lt.s32.totalorder %s2225_s28, %s2847_s3 }
  0x15   : > { %v634_v2 = vunpack.c.l.b16 %v306_v1  ;;  %758 = vmatpush.bf16.msra.mxu0 %v1948_v0  ;;  %2142 = vmatpush.bf16.msra.mxu2 %v1948_v0  ;;  %v2290_v4 = vmov 65535   ;;  %s2858_s30 = smov (!%p208_p11, %s1544_s30), 255  ;;  %v1946_v9 = vld [vmem:[%s2845_s1 + $0x28] sm:$0xff]  ;;  %v1949_v10 = vld [vmem:[%s2845_s1 + $0x40] sm:$0xff]  ;;  %vm654_vm2 = vcmask 154624   ;;  %v1944_v18 = vld [vmem:[%s2845_s1 + $0x18] sm:$0xff] }
  0x16   : > { %v753_v5 = vsel %vm751_vm0, 4294967295, %v2290_v4  ;;  %s1876_s8 = sshll.u32 %s2858_s30, 3  ;;  %v1945_v14 = vld [vmem:[%s2845_s1 + $0x20] sm:$0xff]  ;;  %v1943_v19 = vld [vmem:[%s2845_s1 + $0x10] sm:$0xff]  ;;  %v1942_v20 = vld [vmem:[%s2845_s1 + $0x8] sm:$0xff]  ;;  %s2226_s29 = scalar_lea.hbm %s2225_s28, 256 }
  0x17   : > { %v644_v6 = vpack.c.b16 %v634_v2, %v634_v2  ;;  %v754_v7 = vsel %vm752_vm1, %v753_v5, 0  ;;  %s2387_s19 = scalar_lea.vmem %s2844_s0, %s1876_s8  ;;  %v1941_v26 = vld [vmem:[%s2845_s1] sm:$0xff]  ;;  %p2227_p12 = scmp.ne.s32.totalorder %s2225_s28, %s2226_s29 }
  0x18   : > { %v1877_v11 = vld [vmem:[%s2387_s19 + $0x4] sm:$0xf]  ;;  %v1551_v12 = vld [vmem:[%s2387_s19 + $0x8] sm:$0xf0]  ;;  %v1911_v15 = vld [vmem:[%s2387_s19 + $0x114] sm:$0xf] }
  0x19   : > { %v756_v8 = vand.u32 %v754_v7, %v644_v6  ;;  %759 = vmatpush.bf16.msra.mxu0 %v1947_v3  ;;  %2143 = vmatpush.bf16.msra.mxu2 %v1947_v3  ;;  %v1554_v13 = vor.u32 %v1877_v11, %v1551_v12  ;;  %v1687_v16 = vld [vmem:[%s2387_s19 + $0x118] sm:$0xf0]  ;;  %v1879_v21 = vld [vmem:[%s2387_s19 + $0x14] sm:$0xf]  ;;  %v1913_v23 = vld [vmem:[%s2387_s19 + $0x124] sm:$0xf]  ;;  %p2228_p13 = pnand %p2227_p12, %p2353_p4 }
  0x1a   : > { %v1690_v17 = vor.u32 %v1911_v15, %v1687_v16  ;;  %v1559_v22 = vld [vmem:[%s2387_s19 + $0x18] sm:$0xf0]  ;;  %v1695_v24 = vld [vmem:[%s2387_s19 + $0x128] sm:$0xf0]  ;;  %v1549_v27 = vld [vmem:[%s2387_s19] sm:$0xf] }
  0x1b   : > { %933 = vmatpush.bf16.msra.mxu1 %v756_v8  ;;  %2150 = vmatpush.bf16.msra.mxu3 %v756_v8  ;;  %v1562_v25 = vor.u32 %v1879_v21, %v1559_v22  ;;  %v1878_v28 = vld [vmem:[%s2387_s19 + $0x4] sm:$0xf0]  ;;  %v1677_v29 = vld [vmem:[%s2387_s19 + $0x100] sm:$0xf]  ;;  %v1698_v31 = vor.u32 %v1913_v23, %v1695_v24  ;;  %v1881_v34 = vld [vmem:[%s2387_s19 + $0x24] sm:$0xf]  ;;  %p2229_p0 = pneg %p2228_p13 }
  0x1c   : > { %v1910_v30 = vld [vmem:[%s2387_s19 + $0x104] sm:$0xf0]  ;;  %v1550_v32 = vor.u32 %v1878_v28, %v1549_v27  ;;  %v1567_v35 = vld [vmem:[%s2387_s19 + $0x28] sm:$0xf0]  ;;  %v1915_v36 = vld [vmem:[%s2387_s19 + $0x134] sm:$0xf] }
  0x1d   : > { %760 = vmatpush.bf16.msra.mxu0 %v1946_v9  ;;  %2144 = vmatpush.bf16.msra.mxu2 %v1946_v9  ;;  %v1678_v33 = vor.u32 %v1910_v30, %v1677_v29  ;;  %v1703_v37 = vld [vmem:[%s2387_s19 + $0x138] sm:$0xf0]  ;;  %v1570_v38 = vor.u32 %v1881_v34, %v1567_v35  ;;  %v1557_v39 = vld [vmem:[%s2387_s19 + $0x10] sm:$0xf]  ;;  %v1880_v40 = vld [vmem:[%s2387_s19 + $0x14] sm:$0xf0] }
  0x1e   : > { %v1685_v41 = vld [vmem:[%s2387_s19 + $0x110] sm:$0xf]  ;;  %v1912_v42 = vld [vmem:[%s2387_s19 + $0x114] sm:$0xf0]  ;;  %v1706_v43 = vor.u32 %v1915_v36, %v1703_v37  ;;  %v1558_v44 = vor.u32 %v1880_v40, %v1557_v39  ;;  %v1883_v46 = vld [vmem:[%s2387_s19 + $0x34] sm:$0xf] }
  0x1f   : > { %934 = vmatpush.bf16.msra.mxu1 %v1949_v10  ;;  %2151 = vmatpush.bf16.msra.mxu3 %v1949_v10  ;;  %v1686_v45 = vor.u32 %v1912_v42, %v1685_v41  ;;  %v1575_v47 = vld [vmem:[%s2387_s19 + $0x38] sm:$0xf0]  ;;  %v1917_v48 = vld [vmem:[%s2387_s19 + $0x144] sm:$0xf]  ;;  %v1711_v49 = vld [vmem:[%s2387_s19 + $0x148] sm:$0xf0] }
  0x20   : > { %v1578_v50 = vor.u32 %v1883_v46, %v1575_v47  ;;  %v1565_v51 = vld [vmem:[%s2387_s19 + $0x20] sm:$0xf]  ;;  %v1882_v52 = vld [vmem:[%s2387_s19 + $0x24] sm:$0xf0]  ;;  %v1714_v55 = vor.u32 %v1917_v48, %v1711_v49  ;;  %v1885_v58 = vld [vmem:[%s2387_s19 + $0x44] sm:$0xf] }
  0x21   : > { %761 = vmatpush.bf16.msra.mxu0 %v1945_v14  ;;  %2145 = vmatpush.bf16.msra.mxu2 %v1945_v14  ;;  %v1693_v53 = vld [vmem:[%s2387_s19 + $0x120] sm:$0xf]  ;;  %v1914_v54 = vld [vmem:[%s2387_s19 + $0x124] sm:$0xf0]  ;;  %v1566_v56 = vor.u32 %v1882_v52, %v1565_v51  ;;  %v1583_v59 = vld [vmem:[%s2387_s19 + $0x48] sm:$0xf0] }
  0x22   : > { %1839 = vmatmul.msk.bf16.vlgmr.msra.gmra.mxu1 %vm654_vm2, %v1554_v13  ;;  %1856 = vmatmul.msk.bf16.vlgmr.msra.gmra.mxu3 %vm654_vm2, %v1690_v17  ;;  %v1694_v57 = vor.u32 %v1914_v54, %v1693_v53  ;;  %v1919_v60 = vld [vmem:[%s2387_s19 + $0x154] sm:$0xf]  ;;  %v1719_v61 = vld [vmem:[%s2387_s19 + $0x158] sm:$0xf0]  ;;  %v1586_v62 = vor.u32 %v1885_v58, %v1583_v59  ;;  %v1573_v63 = vld [vmem:[%s2387_s19 + $0x30] sm:$0xf] }
  0x23   : > { %v1884_v0 = vld [vmem:[%s2387_s19 + $0x34] sm:$0xf0]  ;;  %v1701_v1 = vld [vmem:[%s2387_s19 + $0x130] sm:$0xf]  ;;  %v1722_v3 = vor.u32 %v1919_v60, %v1719_v61  ;;  %v1887_v6 = vld [vmem:[%s2387_s19 + $0x54] sm:$0xf] }
  0x24   : > { %v1916_v2 = vld [vmem:[%s2387_s19 + $0x134] sm:$0xf0]  ;;  %v1574_v4 = vor.u32 %v1884_v0, %v1573_v63  ;;  %v1591_v7 = vld [vmem:[%s2387_s19 + $0x58] sm:$0xf0]  ;;  %v1921_v8 = vld [vmem:[%s2387_s19 + $0x164] sm:$0xf] }
  0x25   : > { %762 = vmatpush.bf16.msra.mxu0 %v1944_v18  ;;  %2146 = vmatpush.bf16.msra.mxu2 %v1944_v18  ;;  %v1702_v5 = vor.u32 %v1916_v2, %v1701_v1  ;;  %v1727_v9 = vld [vmem:[%s2387_s19 + $0x168] sm:$0xf0]  ;;  %v1594_v10 = vor.u32 %v1887_v6, %v1591_v7  ;;  %v1581_v11 = vld [vmem:[%s2387_s19 + $0x40] sm:$0xf]  ;;  %v1886_v12 = vld [vmem:[%s2387_s19 + $0x44] sm:$0xf0] }
  0x26   : > { %v1709_v13 = vld [vmem:[%s2387_s19 + $0x140] sm:$0xf]  ;;  %v1918_v14 = vld [vmem:[%s2387_s19 + $0x144] sm:$0xf0]  ;;  %v1730_v15 = vor.u32 %v1921_v8, %v1727_v9  ;;  %v1582_v16 = vor.u32 %v1886_v12, %v1581_v11  ;;  %v1889_v18 = vld [vmem:[%s2387_s19 + $0x64] sm:$0xf] }
  0x27   : > { %v1710_v17 = vor.u32 %v1918_v14, %v1709_v13  ;;  %v1735_v21 = vld [vmem:[%s2387_s19 + $0x178] sm:$0xf0]  ;;  %v1589_v23 = vld [vmem:[%s2387_s19 + $0x50] sm:$0xf]  ;;  %v1888_v24 = vld [vmem:[%s2387_s19 + $0x54] sm:$0xf0] }
  0x28   : > { %v1590_v28 = vor.u32 %v1888_v24, %v1589_v23  ;;  %v1891_v30 = vld [vmem:[%s2387_s19 + $0x74] sm:$0xf]  ;;  %v1597_v35 = vld [vmem:[%s2387_s19 + $0x60] sm:$0xf]  ;;  %v1890_v36 = vld [vmem:[%s2387_s19 + $0x64] sm:$0xf0] }
  0x29   : > { %763 = vmatpush.bf16.msra.mxu0 %v1943_v19  ;;  %2147 = vmatpush.bf16.msra.mxu2 %v1943_v19  ;;  %v1599_v19 = vld [vmem:[%s2387_s19 + $0x68] sm:$0xf0]  ;;  %v1725_v37 = vld [vmem:[%s2387_s19 + $0x160] sm:$0xf]  ;;  %v1598_v40 = vor.u32 %v1890_v36, %v1597_v35  ;;  %v1893_v42 = vld [vmem:[%s2387_s19 + $0x84] sm:$0xf] }
  0x2a   : > { %v1602_v22 = vor.u32 %v1889_v18, %v1599_v19  ;;  %v1605_v47 = vld [vmem:[%s2387_s19 + $0x70] sm:$0xf]  ;;  %v1892_v48 = vld [vmem:[%s2387_s19 + $0x74] sm:$0xf0]  ;;  %v1623_v58 = vld [vmem:[%s2387_s19 + $0x98] sm:$0xf0] }
  0x2b   : > { %v1924_v51 = vld [vmem:[%s2387_s19 + $0x174] sm:$0xf0]  ;;  %v1606_v53 = vor.u32 %v1892_v48, %v1605_v47  ;;  %v1929_v59 = vld [vmem:[%s2387_s19 + $0x1a4] sm:$0xf]  ;;  %v1759_v60 = vld [vmem:[%s2387_s19 + $0x1a8] sm:$0xf0] }
  0x2c   : > { %v1613_v63 = vld [vmem:[%s2387_s19 + $0x80] sm:$0xf]  ;;  %v1894_v0 = vld [vmem:[%s2387_s19 + $0x84] sm:$0xf0]  ;;  %v1897_v18 = vld [vmem:[%s2387_s19 + $0xa4] sm:$0xf] }
  0x2d   : > { %764 = vmatpush.bf16.msra.mxu0 %v1942_v20  ;;  %2148 = vmatpush.bf16.msra.mxu2 %v1942_v20  ;;  %v1923_v20 = vld [vmem:[%s2387_s19 + $0x174] sm:$0xf]  ;;  %v1614_v7 = vor.u32 %v1894_v0, %v1613_v63  ;;  %v1631_v19 = vld [vmem:[%s2387_s19 + $0xa8] sm:$0xf0]  ;;  %v1767_v23 = vld [vmem:[%s2387_s19 + $0x1b8] sm:$0xf0] }
  0x2e   : > { %v1738_v27 = vor.u32 %v1923_v20, %v1735_v21  ;;  %v1634_v24 = vor.u32 %v1897_v18, %v1631_v19  ;;  %v1899_v47 = vld [vmem:[%s2387_s19 + $0xb4] sm:$0xf]  ;;  %v1639_v48 = vld [vmem:[%s2387_s19 + $0xb8] sm:$0xf0]  ;;  %s2230_s5 = scalar_lea.hbm %s2847_s3, 1024 }
  0x2f   : > { %p2232_p2 = scmp.lt.s32.totalorder %s2230_s5, %s2226_s29 }
  0x31   : > { %765 = vmatpush.bf16.msra.mxu0 %v1941_v26  ;;  %2149 = vmatpush.bf16.msra.mxu2 %v1941_v26  ;;  %v1920_v26 = vld [vmem:[%s2387_s19 + $0x154] sm:$0xf0]  ;;  %p2233_p3 = por %p2232_p2, %p2231_p1 }
  0x32   : > { %1840 = vmatmul.msk.bf16.gmra.mxu1 %vm654_vm2, %v1562_v25  ;;  %1857 = vmatmul.msk.bf16.gmra.mxu3 %vm654_vm2, %v1698_v31  ;;  %v1717_v25 = vld [vmem:[%s2387_s19 + $0x150] sm:$0xf]  ;;  %v1607_v31 = vld [vmem:[%s2387_s19 + $0x78] sm:$0xf0] }
  0x33   : > { %v1718_v29 = vor.u32 %v1920_v26, %v1717_v25  ;;  %v1610_v34 = vor.u32 %v1891_v30, %v1607_v31  ;;  %v1621_v25 = vld [vmem:[%s2387_s19 + $0x90] sm:$0xf]  ;;  %v1896_v26 = vld [vmem:[%s2387_s19 + $0x94] sm:$0xf0]  ;;  %p2234_p5 = pnand %p2233_p3, %p2229_p0 }
  0x34   : > { %766 = vmatmul.bf16.vlgmr.msra.gmra.mxu0 %v1550_v32  ;;  %846 = vmatmul.bf16.vlgmr.msra.gmra.mxu2 %v1678_v33  ;;  %v1925_v32 = vld [vmem:[%s2387_s19 + $0x184] sm:$0xf]  ;;  %v1743_v33 = vld [vmem:[%s2387_s19 + $0x188] sm:$0xf0]  ;;  %v1749_v30 = vld [vmem:[%s2387_s19 + $0x190] sm:$0xf]  ;;  %v1622_v36 = vor.u32 %v1896_v26, %v1621_v25 }
  0x35   : > { %v1746_v39 = vor.u32 %v1925_v32, %v1743_v33  ;;  %v1928_v31 = vld [vmem:[%s2387_s19 + $0x194] sm:$0xf0]  ;;  %v1901_v25 = vld [vmem:[%s2387_s19 + $0xc4] sm:$0xf]  ;;  %v1647_v26 = vld [vmem:[%s2387_s19 + $0xc8] sm:$0xf0] }
  0x42   : > { %1841 = vmatmul.msk.bf16.gmra.mxu1 %vm654_vm2, %v1570_v38  ;;  %1858 = vmatmul.msk.bf16.gmra.mxu3 %vm654_vm2, %v1706_v43  ;;  %v1922_v38 = vld [vmem:[%s2387_s19 + $0x164] sm:$0xf0]  ;;  %v1615_v43 = vld [vmem:[%s2387_s19 + $0x88] sm:$0xf0] }
  0x43   : > { %v1726_v41 = vor.u32 %v1922_v38, %v1725_v37  ;;  %v1618_v46 = vor.u32 %v1893_v42, %v1615_v43 }
  0x44   : > { %771 = vmatmul.bf16.gmra.mxu0 %v1558_v44  ;;  %851 = vmatmul.bf16.gmra.mxu2 %v1686_v45  ;;  %v1927_v44 = vld [vmem:[%s2387_s19 + $0x194] sm:$0xf]  ;;  %v1751_v45 = vld [vmem:[%s2387_s19 + $0x198] sm:$0xf0] }
  0x45   : > { %v1754_v52 = vor.u32 %v1927_v44, %v1751_v45 }
  0x52   : > { %1842 = vmatmul.msk.bf16.gmra.mxu1 %vm654_vm2, %v1578_v50  ;;  %1859 = vmatmul.msk.bf16.gmra.mxu3 %vm654_vm2, %v1714_v55  ;;  %v1733_v50 = vld [vmem:[%s2387_s19 + $0x170] sm:$0xf] }
  0x53   : > { %v1734_v54 = vor.u32 %v1924_v51, %v1733_v50 }
  0x54   : > { %776 = vmatmul.bf16.gmra.mxu0 %v1566_v56  ;;  %856 = vmatmul.bf16.gmra.mxu2 %v1694_v57  ;;  %v1895_v57 = vld [vmem:[%s2387_s19 + $0x94] sm:$0xf] }
  0x55   : > { %v1626_v61 = vor.u32 %v1895_v57, %v1623_v58  ;;  %v1898_v57 = vld [vmem:[%s2387_s19 + $0xa4] sm:$0xf0] }
  0x62   : > { %1843 = vmatmul.msk.bf16.gmra.mxu1 %vm654_vm2, %v1586_v62  ;;  %1860 = vmatmul.msk.bf16.gmra.mxu3 %vm654_vm2, %v1722_v3  ;;  %v307_v62 = vld [vmem:[%s2846_s2] sm:$0x3] }
  0x63   : > { %v1741_v3 = vld [vmem:[%s2387_s19 + $0x180] sm:$0xf]  ;;  %v2505_v6 = vperm.slane %v307_v62, 0  ;;  %v2512_v14 = vperm.slane %v307_v62, 1  ;;  %v1930_v62 = vld [vmem:[%s2387_s19 + $0x1a4] sm:$0xf0] }
  0x64   : > { %781 = vmatmul.bf16.gmra.mxu0 %v1574_v4  ;;  %861 = vmatmul.bf16.gmra.mxu2 %v1702_v5  ;;  %v1926_v4 = vld [vmem:[%s2387_s19 + $0x184] sm:$0xf0]  ;;  %v1762_v5 = vor.u32 %v1929_v59, %v1759_v60 }
  0x65   : > { %v1742_v9 = vor.u32 %v1926_v4, %v1741_v3 }
  0x72   : > { %1844 = vmatmul.msk.bf16.gmra.mxu1 %vm654_vm2, %v1594_v10  ;;  %1861 = vmatmul.msk.bf16.gmra.mxu3 %vm654_vm2, %v1730_v15 }
  0x74   : > { %786 = vmatmul.bf16.gmra.mxu0 %v1582_v16  ;;  %866 = vmatmul.bf16.gmra.mxu2 %v1710_v17 }
  0x82   : > { %1845 = vmatmul.msk.bf16.gmra.mxu1 %vm654_vm2, %v1602_v22  ;;  %1862 = vmatmul.msk.bf16.gmra.mxu3 %vm654_vm2, %v1738_v27  ;;  %v1931_v22 = vld [vmem:[%s2387_s19 + $0x1b4] sm:$0xf] }
  0x83   : > { %v1770_v32 = vor.u32 %v1931_v22, %v1767_v23 }
  0x84   : > { %791 = vmatmul.bf16.gmra.mxu0 %v1590_v28  ;;  %871 = vmatmul.bf16.gmra.mxu2 %v1718_v29 }
  0x92   : > { %1846 = vmatmul.msk.bf16.gmra.mxu1 %vm654_vm2, %v1610_v34  ;;  %1863 = vmatmul.msk.bf16.gmra.mxu3 %vm654_vm2, %v1746_v39  ;;  %v1750_v39 = vor.u32 %v1928_v31, %v1749_v30 }
  0x94   : > { %796 = vmatmul.bf16.gmra.mxu0 %v1598_v40  ;;  %876 = vmatmul.bf16.gmra.mxu2 %v1726_v41 }
  0x9f   : > { %v936_v49 = vpop.f32.mrf.mxu1 }
  0xa2   : > { %1847 = vmatmul.msk.bf16.gmra.mxu1 %vm654_vm2, %v1618_v46  ;;  %1864 = vmatmul.msk.bf16.gmra.mxu3 %vm654_vm2, %v1754_v52  ;;  %v1933_v52 = vld [vmem:[%s2387_s19 + $0x1c4] sm:$0xf] }
  0xa4   : > { %801 = vmatmul.bf16.gmra.mxu0 %v1606_v53  ;;  %881 = vmatmul.bf16.gmra.mxu2 %v1734_v54  ;;  %v1775_v53 = vld [vmem:[%s2387_s19 + $0x1c8] sm:$0xf0]  ;;  %v1642_v54 = vor.u32 %v1899_v47, %v1639_v48 }
  0xa5   : > { %v2490_v55 = vpop.f32.mrf.mxu3  ;;  %v1778_v63 = vor.u32 %v1933_v52, %v1775_v53 }
  0xa7   : > { %v938_v56 = vpop.f32.mrf.mxu1 }
  0xad   : > { %v2501_v1 = vpop.f32.mrf.mxu3 }
  0xaf   : > { %v941_v2 = vpop.f32.mrf.mxu1 }
  0xb1   : > { %v767_v8 = vpop.f32.mrf.mxu0 }
  0xb2   : > { %1848 = vmatmul.msk.bf16.gmra.mxu1 %vm654_vm2, %v1626_v61  ;;  %1865 = vmatmul.msk.bf16.gmra.mxu3 %vm654_vm2, %v1762_v5  ;;  %v768_v10 = vadd.f32 %v767_v8, %v2505_v6  ;;  %v1757_v61 = vld [vmem:[%s2387_s19 + $0x1a0] sm:$0xf] }
  0xb4   : > { %806 = vmatmul.bf16.gmra.mxu0 %v1614_v7  ;;  %886 = vmatmul.bf16.gmra.mxu2 %v1742_v9  ;;  %v937_v13 = vadd.f32 %v936_v49, %v768_v10  ;;  %v1758_v10 = vor.u32 %v1930_v62, %v1757_v61 }
  0xb5   : > { %v2510_v11 = vpop.f32.mrf.mxu3 }
  0xb6   : > { %v1161_v20 = vmul.f32 %v2512_v14, %v937_v13  ;;  %vm1096_vm3 = vcmp.ge.f32.partialorder %v937_v13, 0.0 }
  0xb7   : > { %v943_v12 = vpop.f32.mrf.mxu1  ;;  %v2514_v15 = vpop.f32.mrf.mxu2 }
  0xb8   : > { %v1225_v33 = vsel %vm1096_vm3, %v937_v13, %v1161_v20 }
  0xb9   : > { %v769_v16 = vpop.f32.mrf.mxu0 }
  0xba   : > { %v770_v17 = vadd.f32 %v769_v16, %v2505_v6 }
  0xbc   : > { %v939_v21 = vadd.f32 %v938_v56, %v770_v17  ;;  %v1629_v56 = vld [vmem:[%s2387_s19 + $0xa0] sm:$0xf] }
  0xbd   : > { %v2527_v27 = vpop.f32.mrf.mxu3  ;;  %v1630_v5 = vor.u32 %v1898_v57, %v1629_v56 }
  0xbe   : > { %vm1097_vm4 = vcmp.ge.f32.partialorder %v939_v21, 0.0  ;;  %v1162_v28 = vmul.f32 %v2512_v14, %v939_v21 }
  0xbf   : > { %v2530_v29 = vpop.f32.mrf.mxu1  ;;  %v2534_v35 = vpop.f32.mrf.mxu2 }
  0xc0   : > { %v1226_v34 = vsel %vm1097_vm4, %v939_v21, %v1162_v28 }
  0xc1   : > { %v1954_v37 = vpack.c.bf16 %v1226_v34, %v1225_v33  ;;  %v772_v38 = vpop.f32.mrf.mxu0  ;;  %v1783_v33 = vld [vmem:[%s2387_s19 + $0x1d8] sm:$0xf0]  ;;  %v1650_v34 = vor.u32 %v1901_v25, %v1647_v26 }
  0xc2   : > { %1849 = vmatmul.msk.bf16.gmra.mxu1 %vm654_vm2, %v1634_v24  ;;  %1866 = vmatmul.msk.bf16.gmra.mxu3 %vm654_vm2, %v1770_v32  ;;  %v773_v40 = vadd.f32 %v772_v38, %v2505_v6  ;;  %v1935_v32 = vld [vmem:[%s2387_s19 + $0x1d4] sm:$0xf] }
  0xc3   : > { %1955 = vst [vmem:[%s2538_s11] sm:$0xff] %v1954_v37  }
  0xc4   : > { %811 = vmatmul.bf16.gmra.mxu0 %v1622_v36  ;;  %891 = vmatmul.bf16.gmra.mxu2 %v1750_v39  ;;  %v942_v43 = vadd.f32 %v941_v2, %v773_v40  ;;  %v1637_v36 = vld [vmem:[%s2387_s19 + $0xb0] sm:$0xf] }
  0xc5   : > { %v2542_v41 = vpop.f32.mrf.mxu3  ;;  %v1765_v40 = vld [vmem:[%s2387_s19 + $0x1b0] sm:$0xf] }
  0xc6   : > { %v1163_v50 = vmul.f32 %v2512_v14, %v942_v43  ;;  %vm1098_vm5 = vcmp.ge.f32.partialorder %v942_v43, 0.0 }
  0xc7   : > { %v948_v42 = vpop.f32.mrf.mxu1  ;;  %v852_v44 = vpop.f32.mrf.mxu2 }
  0xc8   : > { %v853_v49 = vadd.f32 %v852_v44, %v2505_v6  ;;  %v1227_v2 = vsel %vm1098_vm5, %v942_v43, %v1163_v50  ;;  %v1932_v43 = vld [vmem:[%s2387_s19 + $0x1b4] sm:$0xf0]  ;;  %v1786_v44 = vor.u32 %v1935_v32, %v1783_v33 }
  0xc9   : > { %v774_v45 = vpop.f32.mrf.mxu0  ;;  %v1766_v52 = vor.u32 %v1932_v43, %v1765_v40 }
  0xca   : > { %v775_v46 = vadd.f32 %v774_v45, %v2505_v6  ;;  %v1022_v0 = vadd.f32 %v2490_v55, %v853_v49 }
  0xcc   : > { %v944_v51 = vadd.f32 %v943_v12, %v775_v46  ;;  %v1195_v12 = vmul.f32 %v2512_v14, %v1022_v0  ;;  %vm1130_vm7 = vcmp.ge.f32.partialorder %v1022_v0, 0.0 }
  0xcd   : > { %v2553_v58 = vpop.f32.mrf.mxu3 }
  0xce   : > { %vm1099_vm6 = vcmp.ge.f32.partialorder %v944_v51, 0.0  ;;  %v1164_v59 = vmul.f32 %v2512_v14, %v944_v51  ;;  %v1259_v19 = vsel %vm1130_vm7, %v1022_v0, %v1195_v12  ;;  %v1791_v12 = vld [vmem:[%s2387_s19 + $0x1e8] sm:$0xf0] }
  0xcf   : > { %v2556_v60 = vpop.f32.mrf.mxu1  ;;  %v854_v4 = vpop.f32.mrf.mxu2 }
  0xd0   : > { %v1228_v3 = vsel %vm1099_vm6, %v944_v51, %v1164_v59  ;;  %v855_v8 = vadd.f32 %v854_v4, %v2505_v6  ;;  %v1903_v4 = vld [vmem:[%s2387_s19 + $0xd4] sm:$0xf] }
  0xd1   : > { %v1959_v7 = vpack.c.bf16 %v1228_v3, %v1227_v2  ;;  %v777_v9 = vpop.f32.mrf.mxu0 }
  0xd2   : > { %1850 = vmatmul.msk.bf16.gmra.mxu1 %vm654_vm2, %v1642_v54  ;;  %1867 = vmatmul.msk.bf16.gmra.mxu3 %vm654_vm2, %v1778_v63  ;;  %v1024_v13 = vadd.f32 %v2501_v1, %v855_v8  ;;  %v778_v55 = vadd.f32 %v777_v9, %v2505_v6 }
  0xd3   : > { %2111 = vst [vmem:[%s2538_s11 + $0x8] sm:$0xff] %v1959_v7  }
  0xd4   : > { %816 = vmatmul.bf16.gmra.mxu0 %v1630_v5  ;;  %vm1131_vm8 = vcmp.ge.f32.partialorder %v1024_v13, 0.0  ;;  %v1196_v16 = vmul.f32 %v2512_v14, %v1024_v13  ;;  %896 = vmatmul.bf16.gmra.mxu2 %v1758_v10  ;;  %v947_v1 = vadd.f32 %v2530_v29, %v778_v55  ;;  %v1900_v29 = vld [vmem:[%s2387_s19 + $0xb4] sm:$0xf0]  ;;  %v1655_v5 = vld [vmem:[%s2387_s19 + $0xd8] sm:$0xf0] }
  0xd5   : > { %v2569_v17 = vpop.f32.mrf.mxu3  ;;  %v1638_v48 = vor.u32 %v1900_v29, %v1637_v36  ;;  %v1937_v10 = vld [vmem:[%s2387_s19 + $0x1e4] sm:$0xf]  ;;  %v1645_v55 = vld [vmem:[%s2387_s19 + $0xc0] sm:$0xf] }
  0xd6   : > { %v1260_v20 = vsel %vm1131_vm8, %v1024_v13, %v1196_v16  ;;  %v1165_v30 = vmul.f32 %v2512_v14, %v947_v1  ;;  %vm1100_vm9 = vcmp.ge.f32.partialorder %v947_v1, 0.0  ;;  %v1658_v13 = vor.u32 %v1903_v4, %v1655_v5 }
  0xd7   : > { %v953_v18 = vpop.f32.mrf.mxu1  ;;  %v2039_v21 = vpack.c.bf16 %v1260_v20, %v1259_v19  ;;  %v857_v22 = vpop.f32.mrf.mxu2 }
  0xd8   : > { %v858_v28 = vadd.f32 %v857_v22, %v2505_v6  ;;  %v1794_v22 = vor.u32 %v1937_v10, %v1791_v12 }
  0xd9   : > { %v779_v23 = vpop.f32.mrf.mxu0  ;;  %2127 = vst [vmem:[%s2538_s11 + $0x88] sm:$0xff] %v2039_v21   ;;  %v1773_v21 = vld [vmem:[%s2387_s19 + $0x1c0] sm:$0xf] }
  0xda   : > { %v780_v24 = vadd.f32 %v779_v23, %v2505_v6  ;;  %v1027_v45 = vadd.f32 %v2510_v11, %v858_v28 }
  0xdc   : > { %v949_v31 = vadd.f32 %v948_v42, %v780_v24  ;;  %v1229_v42 = vsel %vm1100_vm9, %v947_v1, %v1165_v30  ;;  %v1197_v53 = vmul.f32 %v2512_v14, %v1027_v45  ;;  %vm1132_vm11 = vcmp.ge.f32.partialorder %v1027_v45, 0.0  ;;  %v1934_v1 = vld [vmem:[%s2387_s19 + $0x1c4] sm:$0xf0] }
  0xdd   : > { %v2582_v37 = vpop.f32.mrf.mxu3  ;;  %v1774_v32 = vor.u32 %v1934_v1, %v1773_v21 }
  0xde   : > { %vm1101_vm10 = vcmp.ge.f32.partialorder %v949_v31, 0.0  ;;  %v1166_v38 = vmul.f32 %v2512_v14, %v949_v31  ;;  %v1261_v61 = vsel %vm1132_vm11, %v1027_v45, %v1197_v53  ;;  %v1799_v53 = vld [vmem:[%s2387_s19 + $0x1f8] sm:$0xf0] }
  0xdf   : > { %v2585_v39 = vpop.f32.mrf.mxu1  ;;  %v859_v47 = vpop.f32.mrf.mxu2 }
  0xe0   : > { %v1230_v46 = vsel %vm1101_vm10, %v949_v31, %v1166_v38  ;;  %v860_v50 = vadd.f32 %v859_v47, %v2505_v6  ;;  %v1905_v47 = vld [vmem:[%s2387_s19 + $0xe4] sm:$0xf] }
  0xe1   : > { %v1964_v49 = vpack.c.bf16 %v1230_v46, %v1229_v42  ;;  %v782_v51 = vpop.f32.mrf.mxu0 }
  0xe2   : > { %1851 = vmatmul.msk.bf16.gmra.mxu1 %vm654_vm2, %v1650_v34  ;;  %1868 = vmatmul.msk.bf16.gmra.mxu3 %vm654_vm2, %v1786_v44  ;;  %v1029_v54 = vadd.f32 %v2527_v27, %v860_v50  ;;  %v783_v11 = vadd.f32 %v782_v51, %v2505_v6 }
  0xe3   : > { %2112 = vst [vmem:[%s2538_s11 + $0x10] sm:$0xff] %v1964_v49  }
  0xe4   : > { %821 = vmatmul.bf16.gmra.mxu0 %v1638_v48  ;;  %vm1133_vm12 = vcmp.ge.f32.partialorder %v1029_v54, 0.0  ;;  %v1198_v56 = vmul.f32 %v2512_v14, %v1029_v54  ;;  %901 = vmatmul.bf16.gmra.mxu2 %v1766_v52  ;;  %v952_v27 = vadd.f32 %v2556_v60, %v783_v11  ;;  %v1902_v60 = vld [vmem:[%s2387_s19 + $0xc4] sm:$0xf0]  ;;  %v1663_v48 = vld [vmem:[%s2387_s19 + $0xe8] sm:$0xf0] }
  0xe5   : > { %v2598_v57 = vpop.f32.mrf.mxu3  ;;  %v1646_v26 = vor.u32 %v1902_v60, %v1645_v55  ;;  %v1939_v52 = vld [vmem:[%s2387_s19 + $0x1f4] sm:$0xf]  ;;  %v1653_v11 = vld [vmem:[%s2387_s19 + $0xd0] sm:$0xf] }
  0xe6   : > { %v1262_v62 = vsel %vm1133_vm12, %v1029_v54, %v1198_v56  ;;  %v1167_v8 = vmul.f32 %v2512_v14, %v952_v27  ;;  %vm1102_vm13 = vcmp.ge.f32.partialorder %v952_v27, 0.0  ;;  %v1666_v54 = vor.u32 %v1905_v47, %v1663_v48 }
  0xe7   : > { %v958_v59 = vpop.f32.mrf.mxu1  ;;  %v2044_v63 = vpack.c.bf16 %v1262_v62, %v1261_v61  ;;  %v862_v0 = vpop.f32.mrf.mxu2  ;;  %v1781_v62 = vld [vmem:[%s2387_s19 + $0x1d0] sm:$0xf] }
  0xe8   : > { %v863_v7 = vadd.f32 %v862_v0, %v2505_v6  ;;  %v1802_v0 = vor.u32 %v1939_v52, %v1799_v53 }
  0xe9   : > { %v784_v2 = vpop.f32.mrf.mxu0  ;;  %2128 = vst [vmem:[%s2538_s11 + $0x90] sm:$0xff] %v2044_v63   ;;  %v1936_v63 = vld [vmem:[%s2387_s19 + $0x1d4] sm:$0xf0] }
  0xea   : > { %v785_v3 = vadd.f32 %v784_v2, %v2505_v6  ;;  %v1032_v23 = vadd.f32 %v2542_v41, %v863_v7  ;;  %v1782_v10 = vor.u32 %v1936_v63, %v1781_v62 }
  0xec   : > { %v954_v9 = vadd.f32 %v953_v18, %v785_v3  ;;  %v1231_v18 = vsel %vm1102_vm13, %v952_v27, %v1167_v8  ;;  %v1199_v33 = vmul.f32 %v2512_v14, %v1032_v23  ;;  %vm1134_vm15 = vcmp.ge.f32.partialorder %v1032_v23, 0.0 }
  0xed   : > { %v2611_v16 = vpop.f32.mrf.mxu3 }
  0xee   : > { %vm1103_vm14 = vcmp.ge.f32.partialorder %v954_v9, 0.0  ;;  %v1168_v19 = vmul.f32 %v2512_v14, %v954_v9  ;;  %v1263_v40 = vsel %vm1134_vm15, %v1032_v23, %v1199_v33  ;;  %v1661_v33 = vld [vmem:[%s2387_s19 + $0xe0] sm:$0xf] }
  0xef   : > { %v2614_v20 = vpop.f32.mrf.mxu1  ;;  %v864_v25 = vpop.f32.mrf.mxu2 }
  0xf0   : > { %v1232_v24 = vsel %vm1103_vm14, %v954_v9, %v1168_v19  ;;  %v865_v30 = vadd.f32 %v864_v25, %v2505_v6  ;;  %v1907_v25 = vld [vmem:[%s2387_s19 + $0xf4] sm:$0xf] }
  0xf1   : > { %v1969_v28 = vpack.c.bf16 %v1232_v24, %v1231_v18  ;;  %v787_v31 = vpop.f32.mrf.mxu0 }
  0xf2   : > { %1852 = vmatmul.msk.bf16.gmra.mxu1 %vm654_vm2, %v1658_v13  ;;  %1869 = vmatmul.msk.bf16.gmra.mxu3 %vm654_vm2, %v1794_v22  ;;  %v1034_v34 = vadd.f32 %v2553_v58, %v865_v30  ;;  %v788_v41 = vadd.f32 %v787_v31, %v2505_v6 }
  0xf3   : > { %2113 = vst [vmem:[%s2538_s11 + $0x18] sm:$0xff] %v1969_v28  }
  0xf4   : > { %826 = vmatmul.bf16.gmra.mxu0 %v1646_v26  ;;  %vm1135_vm0 = vcmp.ge.f32.partialorder %v1034_v34, 0.0  ;;  %v1200_v36 = vmul.f32 %v2512_v14, %v1034_v34  ;;  %906 = vmatmul.bf16.gmra.mxu2 %v1774_v32  ;;  %v957_v58 = vadd.f32 %v2585_v39, %v788_v41  ;;  %v1904_v39 = vld [vmem:[%s2387_s19 + $0xd4] sm:$0xf0]  ;;  %v1671_v26 = vld [vmem:[%s2387_s19 + $0xf8] sm:$0xf0] }
  0xf5   : > { %v2627_v29 = vpop.f32.mrf.mxu3  ;;  %v1654_v5 = vor.u32 %v1904_v39, %v1653_v11  ;;  %v1674_v32 = vor.u32 %v1907_v25, %v1671_v26 }
  0xf6   : > { %v1264_v43 = vsel %vm1135_vm0, %v1034_v34, %v1200_v36  ;;  %v1169_v50 = vmul.f32 %v2512_v14, %v957_v58  ;;  %vm1104_vm1 = vcmp.ge.f32.partialorder %v957_v58, 0.0  ;;  %v1789_v36 = vld [vmem:[%s2387_s19 + $0x1e0] sm:$0xf] }
  0xf7   : > { %v963_v38 = vpop.f32.mrf.mxu1  ;;  %v2049_v44 = vpack.c.bf16 %v1264_v43, %v1263_v40  ;;  %v867_v45 = vpop.f32.mrf.mxu2  ;;  %v1938_v40 = vld [vmem:[%s2387_s19 + $0x1e4] sm:$0xf0] }
  0xf8   : > { %v868_v49 = vadd.f32 %v867_v45, %v2505_v6  ;;  %v1790_v48 = vor.u32 %v1938_v40, %v1789_v36 }
  0xf9   : > { %v789_v42 = vpop.f32.mrf.mxu0  ;;  %2129 = vst [vmem:[%s2538_s11 + $0x98] sm:$0xff] %v2049_v44  }
  0xfa   : > { %v790_v46 = vadd.f32 %v789_v42, %v2505_v6  ;;  %v1037_v2 = vadd.f32 %v2569_v17, %v868_v49 }
  0xfc   : > { %v959_v51 = vadd.f32 %v958_v59, %v790_v46  ;;  %v1233_v59 = vsel %vm1104_vm1, %v957_v58, %v1169_v50  ;;  %v1201_v12 = vmul.f32 %v2512_v14, %v1037_v2  ;;  %vm1136_vm4 = vcmp.ge.f32.partialorder %v1037_v2, 0.0 }
  0xfd   : > { %v2645_v27 = vpop.f32.mrf.mxu3 }
  0xfe   : > { %vm1105_vm3 = vcmp.ge.f32.partialorder %v959_v51, 0.0  ;;  %v1170_v56 = vmul.f32 %v2512_v14, %v959_v51  ;;  %v1265_v19 = vsel %vm1136_vm4, %v1037_v2, %v1201_v12  ;;  %v1679_v2 = vld [vmem:[%s2387_s19 + $0x108] sm:$0xf0]  ;;  %v1797_v12 = vld [vmem:[%s2387_s19 + $0x1f0] sm:$0xf] }
  0xff   : > { %v2641_v61 = vpop.f32.mrf.mxu1  ;;  %v869_v4 = vpop.f32.mrf.mxu2 }
 0x100   : > { %v1234_v3 = vsel %vm1105_vm3, %v959_v51, %v1170_v56  ;;  %v870_v8 = vadd.f32 %v869_v4, %v2505_v6 }
 0x101   : > { %v1974_v7 = vpack.c.bf16 %v1234_v3, %v1233_v59  ;;  %v792_v9 = vpop.f32.mrf.mxu0 }
 0x102   : > { %1853 = vmatmul.msk.bf16.gmra.mxu1 %vm654_vm2, %v1666_v54  ;;  %1870 = vmatmul.msk.bf16.gmra.mxu3 %vm654_vm2, %v1802_v0  ;;  %v1039_v13 = vadd.f32 %v2582_v37, %v870_v8  ;;  %v793_v17 = vadd.f32 %v792_v9, %v2505_v6  ;;  %v1909_v0 = vld [vmem:[%s2387_s19 + $0x104] sm:$0xf]  ;;  %v1669_v8 = vld [vmem:[%s2387_s19 + $0xf0] sm:$0xf] }
 0x103   : > { %2114 = vst [vmem:[%s2538_s11 + $0x20] sm:$0xff] %v1974_v7   ;;  %v1682_v7 = vor.u32 %v1909_v0, %v1679_v2 }
 0x104   : > { %831 = vmatmul.bf16.gmra.mxu0 %v1654_v5  ;;  %vm1137_vm5 = vcmp.ge.f32.partialorder %v1039_v13, 0.0  ;;  %v1202_v55 = vmul.f32 %v2512_v14, %v1039_v13  ;;  %911 = vmatmul.bf16.gmra.mxu2 %v1782_v10  ;;  %v962_v22 = vadd.f32 %v2614_v20, %v793_v17  ;;  %v1906_v20 = vld [vmem:[%s2387_s19 + $0xe4] sm:$0xf0] }
 0x105   : > { %v2657_v37 = vpop.f32.mrf.mxu3  ;;  %v1662_v42 = vor.u32 %v1906_v20, %v1661_v33 }
 0x106   : > { %v1266_v21 = vsel %vm1137_vm5, %v1039_v13, %v1202_v55  ;;  %v1171_v30 = vmul.f32 %v2512_v14, %v962_v22  ;;  %vm1106_vm6 = vcmp.ge.f32.partialorder %v962_v22, 0.0  ;;  %v1940_v13 = vld [vmem:[%s2387_s19 + $0x1f4] sm:$0xf0] }
 0x107   : > { %v968_v60 = vpop.f32.mrf.mxu1  ;;  %v2054_v1 = vpack.c.bf16 %v1266_v21, %v1265_v19  ;;  %v872_v23 = vpop.f32.mrf.mxu2 }
 0x108   : > { %v873_v28 = vadd.f32 %v872_v23, %v2505_v6  ;;  %v1235_v44 = vsel %vm1106_vm6, %v962_v22, %v1171_v30 }
 0x109   : > { %v794_v18 = vpop.f32.mrf.mxu0  ;;  %2130 = vst [vmem:[%s2538_s11 + $0xa0] sm:$0xff] %v2054_v1  }
 0x10a   : > { %v795_v24 = vadd.f32 %v794_v18, %v2505_v6  ;;  %v1042_v43 = vadd.f32 %v2598_v57, %v873_v28  ;;  %v1798_v18 = vor.u32 %v1940_v13, %v1797_v12 }
 0x10c   : > { %v964_v31 = vadd.f32 %v963_v38, %v795_v24  ;;  %v1203_v50 = vmul.f32 %v2512_v14, %v1042_v43  ;;  %vm1138_vm8 = vcmp.ge.f32.partialorder %v1042_v43, 0.0 }
 0x10d   : > { %v2675_v49 = vpop.f32.mrf.mxu3 }
 0x10e   : > { %vm1107_vm7 = vcmp.ge.f32.partialorder %v964_v31, 0.0  ;;  %v1172_v34 = vmul.f32 %v2512_v14, %v964_v31  ;;  %v1267_v54 = vsel %vm1138_vm8, %v1042_v43, %v1203_v50 }
 0x10f   : > { %v2668_v41 = vpop.f32.mrf.mxu1  ;;  %v874_v45 = vpop.f32.mrf.mxu2 }
 0x110   : > { %v1236_v58 = vsel %vm1107_vm7, %v964_v31, %v1172_v34  ;;  %v875_v38 = vadd.f32 %v874_v45, %v2505_v6 }
 0x111   : > { %v1979_v46 = vpack.c.bf16 %v1236_v58, %v1235_v44  ;;  %v797_v47 = vpop.f32.mrf.mxu0 }
 0x112   : > { %1854 = vmatmul.msk.bf16.gmra.mxu1 %vm654_vm2, %v1674_v32  ;;  %v1044_v51 = vadd.f32 %v2611_v16, %v875_v38  ;;  %v798_v57 = vadd.f32 %v797_v47, %v2505_v6 }
 0x113   : > { %2115 = vst [vmem:[%s2538_s11 + $0x28] sm:$0xff] %v1979_v46  }
 0x114   : > { %836 = vmatmul.bf16.gmra.mxu0 %v1662_v42  ;;  %vm1139_vm9 = vcmp.ge.f32.partialorder %v1044_v51, 0.0  ;;  %v1204_v52 = vmul.f32 %v2512_v14, %v1044_v51  ;;  %916 = vmatmul.bf16.gmra.mxu2 %v1790_v48  ;;  %v967_v56 = vadd.f32 %v2641_v61, %v798_v57  ;;  %v1908_v61 = vld [vmem:[%s2387_s19 + $0xf4] sm:$0xf0] }
 0x115   : > { %v2689_v5 = vpop.f32.mrf.mxu3  ;;  %v1670_v1 = vor.u32 %v1908_v61, %v1669_v8 }
 0x116   : > { %v1268_v11 = vsel %vm1139_vm9, %v1044_v51, %v1204_v52  ;;  %v1173_v3 = vmul.f32 %v2512_v14, %v967_v56  ;;  %vm1108_vm10 = vcmp.ge.f32.partialorder %v967_v56, 0.0 }
 0x117   : > { %v973_v53 = vpop.f32.mrf.mxu1  ;;  %v2059_v39 = vpack.c.bf16 %v1268_v11, %v1267_v54  ;;  %v877_v62 = vpop.f32.mrf.mxu2 }
 0x118   : > { %v878_v59 = vadd.f32 %v877_v62, %v2505_v6  ;;  %v1237_v55 = vsel %vm1108_vm10, %v967_v56, %v1173_v3 }
 0x119   : > { %v799_v16 = vpop.f32.mrf.mxu0  ;;  %2131 = vst [vmem:[%s2538_s11 + $0xa8] sm:$0xff] %v2059_v39  }
 0x11a   : > { %v800_v63 = vadd.f32 %v799_v16, %v2505_v6  ;;  %v1047_v17 = vadd.f32 %v2627_v29, %v878_v59 }
 0x11c   : > { %v969_v4 = vadd.f32 %v968_v60, %v800_v63  ;;  %v1205_v24 = vmul.f32 %v2512_v14, %v1047_v17  ;;  %vm1140_vm12 = vcmp.ge.f32.partialorder %v1047_v17, 0.0 }
 0x11d   : > { %v1058_v30 = vpop.f32.mrf.mxu3 }
 0x11e   : > { %vm1109_vm11 = vcmp.ge.f32.partialorder %v969_v4, 0.0  ;;  %v1174_v9 = vmul.f32 %v2512_v14, %v969_v4  ;;  %v1269_v31 = vsel %vm1140_vm12, %v1047_v17, %v1205_v24 }
 0x11f   : > { %v976_v10 = vpop.f32.mrf.mxu1  ;;  %v879_v21 = vpop.f32.mrf.mxu2 }
 0x120   : > { %v1238_v19 = vsel %vm1109_vm11, %v969_v4, %v1174_v9  ;;  %v880_v22 = vadd.f32 %v879_v21, %v2505_v6 }
 0x121   : > { %v1984_v60 = vpack.c.bf16 %v1238_v19, %v1237_v55  ;;  %v802_v23 = vpop.f32.mrf.mxu0 }
 0x122   : > { %1855 = vmatmul.msk.bf16.gmra.mxu1 %vm654_vm2, %v1682_v7  ;;  %v1049_v25 = vadd.f32 %v2645_v27, %v880_v22  ;;  %v803_v29 = vadd.f32 %v802_v23, %v2505_v6 }
 0x123   : > { %2116 = vst [vmem:[%s2538_s11 + $0x30] sm:$0xff] %v1984_v60  }
 0x124   : > { %841 = vmatmul.bf16.gmra.mxu0 %v1670_v1  ;;  %vm1141_vm13 = vcmp.ge.f32.partialorder %v1049_v25, 0.0  ;;  %v1206_v26 = vmul.f32 %v2512_v14, %v1049_v25  ;;  %921 = vmatmul.bf16.gmra.mxu2 %v1798_v18  ;;  %v972_v20 = vadd.f32 %v2668_v41, %v803_v29 }
 0x125   : > { %v1061_v47 = vpop.f32.mrf.mxu3 }
 0x126   : > { %v1270_v32 = vsel %vm1141_vm13, %v1049_v25, %v1206_v26  ;;  %v1175_v43 = vmul.f32 %v2512_v14, %v972_v20  ;;  %vm1110_vm2 = vcmp.ge.f32.partialorder %v972_v20, 0.0 }
 0x127   : > { %v978_v28 = vpop.f32.mrf.mxu1  ;;  %v2064_v33 = vpack.c.bf16 %v1270_v32, %v1269_v31  ;;  %v882_v34 = vpop.f32.mrf.mxu2 }
 0x128   : > { %v883_v40 = vadd.f32 %v882_v34, %v2505_v6  ;;  %v1239_v46 = vsel %vm1110_vm2, %v972_v20, %v1175_v43 }
 0x129   : > { %v804_v36 = vpop.f32.mrf.mxu0  ;;  %2132 = vst [vmem:[%s2538_s11 + $0xb0] sm:$0xff] %v2064_v33  }
 0x12a   : > { %v805_v27 = vadd.f32 %v804_v36, %v2505_v6  ;;  %v1052_v42 = vadd.f32 %v2657_v37, %v883_v40 }
 0x12c   : > { %v974_v44 = vadd.f32 %v973_v53, %v805_v27  ;;  %v1207_v57 = vmul.f32 %v2512_v14, %v1052_v42  ;;  %vm1142_vm15 = vcmp.ge.f32.partialorder %v1052_v42, 0.0 }
 0x12d   : > { %v1063_v2 = vpop.f32.mrf.mxu3 }
 0x12e   : > { %vm1111_vm14 = vcmp.ge.f32.partialorder %v974_v44, 0.0  ;;  %v1176_v58 = vmul.f32 %v2512_v14, %v974_v44  ;;  %v1271_v11 = vsel %vm1142_vm15, %v1052_v42, %v1207_v57 }
 0x12f   : > { %v981_v45 = vpop.f32.mrf.mxu1  ;;  %v884_v38 = vpop.f32.mrf.mxu2 }
 0x130   : > { %v1240_v41 = vsel %vm1111_vm14, %v974_v44, %v1176_v58  ;;  %v885_v50 = vadd.f32 %v884_v38, %v2505_v6 }
 0x131   : > { %v1989_v48 = vpack.c.bf16 %v1240_v41, %v1239_v46  ;;  %v807_v51 = vpop.f32.mrf.mxu0 }
 0x132   : > { %v1054_v52 = vadd.f32 %v2675_v49, %v885_v50  ;;  %v808_v53 = vadd.f32 %v807_v51, %v2505_v6 }
 0x133   : > { %2117 = vst [vmem:[%s2538_s11 + $0x38] sm:$0xff] %v1989_v48  }
 0x134   : > { %vm1143_vm0 = vcmp.ge.f32.partialorder %v1054_v52, 0.0  ;;  %v1208_v37 = vmul.f32 %v2512_v14, %v1054_v52  ;;  %v977_v62 = vadd.f32 %v976_v10, %v808_v53 }
 0x135   : > { %v1066_v1 = vpop.f32.mrf.mxu3 }
 0x136   : > { %v1272_v39 = vsel %vm1143_vm0, %v1054_v52, %v1208_v37  ;;  %v1177_v59 = vmul.f32 %v2512_v14, %v977_v62  ;;  %vm1112_vm1 = vcmp.ge.f32.partialorder %v977_v62, 0.0 }
 0x137   : > { %v983_v54 = vpop.f32.mrf.mxu1  ;;  %v2069_v56 = vpack.c.bf16 %v1272_v39, %v1271_v11  ;;  %v887_v16 = vpop.f32.mrf.mxu2 }
 0x138   : > { %v888_v49 = vadd.f32 %v887_v16, %v2505_v6  ;;  %v1241_v61 = vsel %vm1112_vm1, %v977_v62, %v1177_v59 }
 0x139   : > { %v809_v63 = vpop.f32.mrf.mxu0  ;;  %2133 = vst [vmem:[%s2538_s11 + $0xb8] sm:$0xff] %v2069_v56  }
 0x13a   : > { %v810_v0 = vadd.f32 %v809_v63, %v2505_v6  ;;  %v1057_v8 = vadd.f32 %v2689_v5, %v888_v49 }
 0x13c   : > { %v979_v3 = vadd.f32 %v978_v28, %v810_v0  ;;  %v1209_v55 = vmul.f32 %v2512_v14, %v1057_v8  ;;  %vm1144_vm4 = vcmp.ge.f32.partialorder %v1057_v8, 0.0 }
 0x13d   : > { %v1068_v20 = vpop.f32.mrf.mxu3 }
 0x13e   : > { %vm1113_vm3 = vcmp.ge.f32.partialorder %v979_v3, 0.0  ;;  %v1178_v4 = vmul.f32 %v2512_v14, %v979_v3  ;;  %v1273_v22 = vsel %vm1144_vm4, %v1057_v8, %v1209_v55 }
 0x13f   : > { %v986_v7 = vpop.f32.mrf.mxu1  ;;  %v889_v10 = vpop.f32.mrf.mxu2 }
 0x140   : > { %v1242_v9 = vsel %vm1113_vm3, %v979_v3, %v1178_v4  ;;  %v890_v13 = vadd.f32 %v889_v10, %v2505_v6 }
 0x141   : > { %v1994_v12 = vpack.c.bf16 %v1242_v9, %v1241_v61  ;;  %v812_v17 = vpop.f32.mrf.mxu0 }
 0x142   : > { %v1059_v19 = vadd.f32 %v1058_v30, %v890_v13  ;;  %v813_v21 = vadd.f32 %v812_v17, %v2505_v6 }
 0x143   : > { %2118 = vst [vmem:[%s2538_s11 + $0x40] sm:$0xff] %v1994_v12  }
 0x144   : > { %vm1145_vm5 = vcmp.ge.f32.partialorder %v1059_v19, 0.0  ;;  %v1210_v60 = vmul.f32 %v2512_v14, %v1059_v19  ;;  %v982_v24 = vadd.f32 %v981_v45, %v813_v21 }
 0x145   : > { %v1071_v52 = vpop.f32.mrf.mxu3 }
 0x146   : > { %v1274_v23 = vsel %vm1145_vm5, %v1059_v19, %v1210_v60  ;;  %v1179_v30 = vmul.f32 %v2512_v14, %v982_v24  ;;  %vm1114_vm6 = vcmp.ge.f32.partialorder %v982_v24, 0.0 }
 0x147   : > { %v988_v5 = vpop.f32.mrf.mxu1  ;;  %v2074_v18 = vpack.c.bf16 %v1274_v23, %v1273_v22  ;;  %v892_v25 = vpop.f32.mrf.mxu2 }
 0x148   : > { %v893_v28 = vadd.f32 %v892_v25, %v2505_v6  ;;  %v1243_v36 = vsel %vm1114_vm6, %v982_v24, %v1179_v30 }
 0x149   : > { %v814_v29 = vpop.f32.mrf.mxu0  ;;  %2134 = vst [vmem:[%s2538_s11 + $0xc0] sm:$0xff] %v2074_v18  }
 0x14a   : > { %v815_v26 = vadd.f32 %v814_v29, %v2505_v6  ;;  %v1062_v34 = vadd.f32 %v1061_v47, %v893_v28 }
 0x14c   : > { %v984_v31 = vadd.f32 %v983_v54, %v815_v26  ;;  %v1211_v45 = vmul.f32 %v2512_v14, %v1062_v34  ;;  %vm1146_vm8 = vcmp.ge.f32.partialorder %v1062_v34, 0.0 }
 0x14d   : > { %v1073_v4 = vpop.f32.mrf.mxu3 }
 0x14e   : > { %vm1115_vm7 = vcmp.ge.f32.partialorder %v984_v31, 0.0  ;;  %v1180_v32 = vmul.f32 %v2512_v14, %v984_v31  ;;  %v1275_v47 = vsel %vm1146_vm8, %v1062_v34, %v1211_v45 }
 0x14f   : > { %v991_v33 = vpop.f32.mrf.mxu1  ;;  %v894_v40 = vpop.f32.mrf.mxu2 }
 0x150   : > { %v1244_v27 = vsel %vm1115_vm7, %v984_v31, %v1180_v32  ;;  %v895_v44 = vadd.f32 %v894_v40, %v2505_v6 }
 0x151   : > { %v1999_v43 = vpack.c.bf16 %v1244_v27, %v1243_v36  ;;  %v817_v58 = vpop.f32.mrf.mxu0 }
 0x152   : > { %v1064_v42 = vadd.f32 %v1063_v2, %v895_v44  ;;  %v818_v46 = vadd.f32 %v817_v58, %v2505_v6 }
 0x153   : > { %2119 = vst [vmem:[%s2538_s11 + $0x48] sm:$0xff] %v1999_v43  }
 0x154   : > { %vm1147_vm9 = vcmp.ge.f32.partialorder %v1064_v42, 0.0  ;;  %v1212_v41 = vmul.f32 %v2512_v14, %v1064_v42  ;;  %v987_v51 = vadd.f32 %v986_v7, %v818_v46 }
 0x155   : > { %v1076_v23 = vpop.f32.mrf.mxu3 }
 0x156   : > { %v1276_v48 = vsel %vm1147_vm9, %v1064_v42, %v1212_v41  ;;  %v1181_v11 = vmul.f32 %v2512_v14, %v987_v51  ;;  %vm1116_vm10 = vcmp.ge.f32.partialorder %v987_v51, 0.0 }
 0x157   : > { %v993_v38 = vpop.f32.mrf.mxu1  ;;  %v2079_v50 = vpack.c.bf16 %v1276_v48, %v1275_v47  ;;  %v897_v57 = vpop.f32.mrf.mxu2 }
 0x158   : > { %v898_v54 = vadd.f32 %v897_v57, %v2505_v6  ;;  %v1245_v63 = vsel %vm1116_vm10, %v987_v51, %v1181_v11 }
 0x159   : > { %v819_v53 = vpop.f32.mrf.mxu0  ;;  %2135 = vst [vmem:[%s2538_s11 + $0xc8] sm:$0xff] %v2079_v50  }
 0x15a   : > { %v820_v37 = vadd.f32 %v819_v53, %v2505_v6  ;;  %v1067_v16 = vadd.f32 %v1066_v1, %v898_v54 }
 0x15c   : > { %v989_v39 = vadd.f32 %v988_v5, %v820_v37  ;;  %v1213_v7 = vmul.f32 %v2512_v14, %v1067_v16  ;;  %vm1148_vm12 = vcmp.ge.f32.partialorder %v1067_v16, 0.0 }
 0x15d   : > { %v1078_v40 = vpop.f32.mrf.mxu3 }
 0x15e   : > { %vm1117_vm11 = vcmp.ge.f32.partialorder %v989_v39, 0.0  ;;  %v1182_v56 = vmul.f32 %v2512_v14, %v989_v39  ;;  %v1277_v12 = vsel %vm1148_vm12, %v1067_v16, %v1213_v7 }
 0x15f   : > { %v996_v62 = vpop.f32.mrf.mxu1  ;;  %v899_v2 = vpop.f32.mrf.mxu2 }
 0x160   : > { %v1246_v0 = vsel %vm1117_vm11, %v989_v39, %v1182_v56  ;;  %v900_v59 = vadd.f32 %v899_v2, %v2505_v6 }
 0x161   : > { %v2004_v49 = vpack.c.bf16 %v1246_v0, %v1245_v63  ;;  %v822_v3 = vpop.f32.mrf.mxu0 }
 0x162   : > { %v1069_v8 = vadd.f32 %v1068_v20, %v900_v59  ;;  %v823_v61 = vadd.f32 %v822_v3, %v2505_v6 }
 0x163   : > { %2120 = vst [vmem:[%s2538_s11 + $0x50] sm:$0xff] %v2004_v49  }
 0x164   : > { %vm1149_vm13 = vcmp.ge.f32.partialorder %v1069_v8, 0.0  ;;  %v1214_v9 = vmul.f32 %v2512_v14, %v1069_v8  ;;  %v992_v55 = vadd.f32 %v991_v33, %v823_v61 }
 0x165   : > { %v1081_v54 = vpop.f32.mrf.mxu3 }
 0x166   : > { %v1278_v13 = vsel %vm1149_vm13, %v1069_v8, %v1214_v9  ;;  %v1183_v5 = vmul.f32 %v2512_v14, %v992_v55  ;;  %vm1118_vm2 = vcmp.ge.f32.partialorder %v992_v55, 0.0 }
 0x167   : > { %v998_v10 = vpop.f32.mrf.mxu1  ;;  %v2084_v17 = vpack.c.bf16 %v1278_v13, %v1277_v12  ;;  %v902_v19 = vpop.f32.mrf.mxu2 }
 0x168   : > { %v903_v60 = vadd.f32 %v902_v19, %v2505_v6  ;;  %v1247_v29 = vsel %vm1118_vm2, %v992_v55, %v1183_v5 }
 0x169   : > { %v824_v21 = vpop.f32.mrf.mxu0  ;;  %2136 = vst [vmem:[%s2538_s11 + $0xd0] sm:$0xff] %v2084_v17  }
 0x16a   : > { %v825_v1 = vadd.f32 %v824_v21, %v2505_v6  ;;  %v1072_v25 = vadd.f32 %v1071_v52, %v903_v60 }
 0x16c   : > { %v994_v22 = vadd.f32 %v993_v38, %v825_v1  ;;  %v1215_v33 = vmul.f32 %v2512_v14, %v1072_v25  ;;  %vm1150_vm15 = vcmp.ge.f32.partialorder %v1072_v25, 0.0 }
 0x16d   : > { %v1083_v9 = vpop.f32.mrf.mxu3 }
 0x16e   : > { %vm1119_vm14 = vcmp.ge.f32.partialorder %v994_v22, 0.0  ;;  %v1184_v18 = vmul.f32 %v2512_v14, %v994_v22  ;;  %v1279_v43 = vsel %vm1150_vm15, %v1072_v25, %v1215_v33 }
 0x16f   : > { %v1001_v24 = vpop.f32.mrf.mxu1  ;;  %v904_v28 = vpop.f32.mrf.mxu2 }
 0x170   : > { %v1248_v26 = vsel %vm1119_vm14, %v994_v22, %v1184_v18  ;;  %v905_v31 = vadd.f32 %v904_v28, %v2505_v6 }
 0x171   : > { %v2009_v30 = vpack.c.bf16 %v1248_v26, %v1247_v29  ;;  %v827_v32 = vpop.f32.mrf.mxu0 }
 0x172   : > { %v1074_v20 = vadd.f32 %v1073_v4, %v905_v31  ;;  %v828_v34 = vadd.f32 %v827_v32, %v2505_v6 }
 0x173   : > { %2121 = vst [vmem:[%s2538_s11 + $0x58] sm:$0xff] %v2009_v30  }
 0x174   : > { %vm1151_vm0 = vcmp.ge.f32.partialorder %v1074_v20, 0.0  ;;  %v1216_v36 = vmul.f32 %v2512_v14, %v1074_v20  ;;  %v997_v45 = vadd.f32 %v996_v62, %v828_v34 }
 0x175   : > { %v1086_v29 = vpop.f32.mrf.mxu3 }
 0x176   : > { %v1280_v44 = vsel %vm1151_vm0, %v1074_v20, %v1216_v36  ;;  %v1185_v47 = vmul.f32 %v2512_v14, %v997_v45  ;;  %vm1120_vm1 = vcmp.ge.f32.partialorder %v997_v45, 0.0 }
 0x177   : > { %v1003_v27 = vpop.f32.mrf.mxu1  ;;  %v2089_v58 = vpack.c.bf16 %v1280_v44, %v1279_v43  ;;  %v907_v42 = vpop.f32.mrf.mxu2 }
 0x178   : > { %v908_v38 = vadd.f32 %v907_v42, %v2505_v6  ;;  %v1249_v52 = vsel %vm1120_vm1, %v997_v45, %v1185_v47  ;;  %v848_v47 = vadd.f32 %v2514_v15, %v2505_v6 }
 0x179   : > { %v829_v46 = vpop.f32.mrf.mxu0  ;;  %2137 = vst [vmem:[%s2538_s11 + $0xd8] sm:$0xff] %v2089_v58  }
 0x17a   : > { %v830_v41 = vadd.f32 %v829_v46, %v2505_v6  ;;  %v1077_v57 = vadd.f32 %v1076_v23, %v908_v38 }
 0x17c   : > { %v999_v48 = vadd.f32 %v998_v10, %v830_v41  ;;  %v1217_v62 = vmul.f32 %v2512_v14, %v1077_v57  ;;  %vm1152_vm4 = vcmp.ge.f32.partialorder %v1077_v57, 0.0 }
 0x17d   : > { %v1088_v58 = vpop.f32.mrf.mxu3 }
 0x17e   : > { %vm1121_vm3 = vcmp.ge.f32.partialorder %v999_v48, 0.0  ;;  %v1186_v50 = vmul.f32 %v2512_v14, %v999_v48  ;;  %v1281_v49 = vsel %vm1152_vm4, %v1077_v57, %v1217_v62 }
 0x17f   : > { %v1006_v51 = vpop.f32.mrf.mxu1  ;;  %v909_v37 = vpop.f32.mrf.mxu2 }
 0x180   : > { %v1250_v53 = vsel %vm1121_vm3, %v999_v48, %v1186_v50  ;;  %v910_v39 = vadd.f32 %v909_v37, %v2505_v6 }
 0x181   : > { %v2014_v11 = vpack.c.bf16 %v1250_v53, %v1249_v52  ;;  %v832_v56 = vpop.f32.mrf.mxu0 }
 0x182   : > { %v1079_v16 = vadd.f32 %v1078_v40, %v910_v39  ;;  %v833_v63 = vadd.f32 %v832_v56, %v2505_v6 }
 0x183   : > { %2122 = vst [vmem:[%s2538_s11 + $0x60] sm:$0xff] %v2014_v11  }
 0x184   : > { %vm1153_vm5 = vcmp.ge.f32.partialorder %v1079_v16, 0.0  ;;  %v1218_v0 = vmul.f32 %v2512_v14, %v1079_v16  ;;  %v1002_v4 = vadd.f32 %v1001_v24, %v833_v63 }
 0x186   : > { %v1282_v59 = vsel %vm1153_vm5, %v1079_v16, %v1218_v0  ;;  %v1187_v12 = vmul.f32 %v2512_v14, %v1002_v4  ;;  %vm1122_vm6 = vcmp.ge.f32.partialorder %v1002_v4, 0.0 }
 0x187   : > { %v1008_v2 = vpop.f32.mrf.mxu1  ;;  %v2094_v3 = vpack.c.bf16 %v1282_v59, %v1281_v49  ;;  %v912_v7 = vpop.f32.mrf.mxu2 }
 0x188   : > { %v913_v10 = vadd.f32 %v912_v7, %v2505_v6  ;;  %v1251_v21 = vsel %vm1122_vm6, %v1002_v4, %v1187_v12 }
 0x189   : > { %v834_v8 = vpop.f32.mrf.mxu0  ;;  %2138 = vst [vmem:[%s2538_s11 + $0xe0] sm:$0xff] %v2094_v3  }
 0x18a   : > { %v835_v61 = vadd.f32 %v834_v8, %v2505_v6  ;;  %v1082_v19 = vadd.f32 %v1081_v54, %v913_v10  ;;  %v850_v54 = vadd.f32 %v2534_v35, %v2505_v6 }
 0x18c   : > { %v1004_v13 = vadd.f32 %v1003_v27, %v835_v61  ;;  %v1219_v18 = vmul.f32 %v2512_v14, %v1082_v19  ;;  %vm1154_vm8 = vcmp.ge.f32.partialorder %v1082_v19, 0.0 }
 0x18e   : > { %vm1123_vm7 = vcmp.ge.f32.partialorder %v1004_v13, 0.0  ;;  %v1188_v17 = vmul.f32 %v2512_v14, %v1004_v13  ;;  %v1283_v30 = vsel %vm1154_vm8, %v1082_v19, %v1219_v18 }
 0x18f   : > { %v1011_v55 = vpop.f32.mrf.mxu1  ;;  %v914_v60 = vpop.f32.mrf.mxu2 }
 0x190   : > { %v1252_v1 = vsel %vm1123_vm7, %v1004_v13, %v1188_v17  ;;  %v915_v22 = vadd.f32 %v914_v60, %v2505_v6 }
 0x191   : > { %v2019_v5 = vpack.c.bf16 %v1252_v1, %v1251_v21  ;;  %v837_v23 = vpop.f32.mrf.mxu0 }
 0x192   : > { %v1084_v24 = vadd.f32 %v1083_v9, %v915_v22  ;;  %v838_v25 = vadd.f32 %v837_v23, %v2505_v6 }
 0x193   : > { %2123 = vst [vmem:[%s2538_s11 + $0x68] sm:$0xff] %v2019_v5  }
 0x194   : > { %vm1155_vm9 = vcmp.ge.f32.partialorder %v1084_v24, 0.0  ;;  %v1220_v26 = vmul.f32 %v2512_v14, %v1084_v24  ;;  %v1007_v33 = vadd.f32 %v1006_v51, %v838_v25 }
 0x196   : > { %v1284_v31 = vsel %vm1155_vm9, %v1084_v24, %v1220_v26  ;;  %v1189_v40 = vmul.f32 %v2512_v14, %v1007_v33  ;;  %vm1124_vm10 = vcmp.ge.f32.partialorder %v1007_v33, 0.0 }
 0x197   : > { %v1013_v28 = vpop.f32.mrf.mxu1  ;;  %v2099_v32 = vpack.c.bf16 %v1284_v31, %v1283_v30  ;;  %v917_v20 = vpop.f32.mrf.mxu2 }
 0x198   : > { %v918_v27 = vadd.f32 %v917_v20, %v2505_v6  ;;  %v1253_v46 = vsel %vm1124_vm10, %v1007_v33, %v1189_v40 }
 0x199   : > { %v839_v34 = vpop.f32.mrf.mxu0  ;;  %2139 = vst [vmem:[%s2538_s11 + $0xe8] sm:$0xff] %v2099_v32  }
 0x19a   : > { %v840_v36 = vadd.f32 %v839_v34, %v2505_v6  ;;  %v1087_v42 = vadd.f32 %v1086_v29, %v918_v27 }
 0x19c   : > { %v1009_v43 = vadd.f32 %v1008_v2, %v840_v36  ;;  %v1221_v57 = vmul.f32 %v2512_v14, %v1087_v42  ;;  %vm1156_vm12 = vcmp.ge.f32.partialorder %v1087_v42, 0.0  ;;  %v1091_v2 = vpop.f32.mrf.mxu3 }
 0x19e   : > { %vm1125_vm11 = vcmp.ge.f32.partialorder %v1009_v43, 0.0  ;;  %v1190_v44 = vmul.f32 %v2512_v14, %v1009_v43  ;;  %v1285_v39 = vsel %vm1156_vm12, %v1087_v42, %v1221_v57 }
 0x19f   : > { %v1016_v45 = vpop.f32.mrf.mxu1  ;;  %v919_v38 = vpop.f32.mrf.mxu2 }
 0x1a0   : > { %v1254_v41 = vsel %vm1125_vm11, %v1009_v43, %v1190_v44  ;;  %v920_v50 = vadd.f32 %v919_v38, %v2505_v6  ;;  %v1017_v52 = vadd.f32 %v1016_v45, %v848_v47 }
 0x1a1   : > { %v2024_v48 = vpack.c.bf16 %v1254_v41, %v1253_v46  ;;  %v842_v51 = vpop.f32.mrf.mxu0 }
 0x1a2   : > { %v1089_v53 = vadd.f32 %v1088_v58, %v920_v50  ;;  %v843_v37 = vadd.f32 %v842_v51, %v2505_v6  ;;  %v1193_v56 = vmul.f32 %v2512_v14, %v1017_v52  ;;  %vm1128_vm2 = vcmp.ge.f32.partialorder %v1017_v52, 0.0 }
 0x1a3   : > { %2124 = vst [vmem:[%s2538_s11 + $0x70] sm:$0xff] %v2024_v48  }
 0x1a4   : > { %vm1157_vm13 = vcmp.ge.f32.partialorder %v1089_v53, 0.0  ;;  %v1222_v11 = vmul.f32 %v2512_v14, %v1089_v53  ;;  %v1012_v0 = vadd.f32 %v1011_v55, %v843_v37  ;;  %v1257_v4 = vsel %vm1128_vm2, %v1017_v52, %v1193_v56  ;;  %v1093_v60 = vpop.f32.mrf.mxu3 }
 0x1a6   : > { %v1286_v62 = vsel %vm1157_vm13, %v1089_v53, %v1222_v11  ;;  %v1191_v61 = vmul.f32 %v2512_v14, %v1012_v0  ;;  %vm1126_vm15 = vcmp.ge.f32.partialorder %v1012_v0, 0.0 }
 0x1a7   : > { %v1018_v15 = vpop.f32.mrf.mxu1  ;;  %v2104_v63 = vpack.c.bf16 %v1286_v62, %v1285_v39  ;;  %v922_v49 = vpop.f32.mrf.mxu2 }
 0x1a8   : > { %v1019_v16 = vadd.f32 %v1018_v15, %v850_v54  ;;  %v923_v8 = vadd.f32 %v922_v49, %v2505_v6  ;;  %v1255_v17 = vsel %vm1126_vm15, %v1012_v0, %v1191_v61 }
 0x1a9   : > { %v844_v59 = vpop.f32.mrf.mxu0  ;;  %2140 = vst [vmem:[%s2538_s11 + $0xf0] sm:$0xff] %v2104_v63  }
 0x1aa   : > { %vm1129_vm14 = vcmp.ge.f32.partialorder %v1019_v16, 0.0  ;;  %v1194_v35 = vmul.f32 %v2512_v14, %v1019_v16  ;;  %v845_v3 = vadd.f32 %v844_v59, %v2505_v6  ;;  %v1092_v13 = vadd.f32 %v1091_v2, %v923_v8 }
 0x1ac   : > { %v1258_v7 = vsel %vm1129_vm14, %v1019_v16, %v1194_v35  ;;  %v1014_v10 = vadd.f32 %v1013_v28, %v845_v3  ;;  %v1223_v5 = vmul.f32 %v2512_v14, %v1092_v13  ;;  %vm1158_vm1 = vcmp.ge.f32.partialorder %v1092_v13, 0.0 }
 0x1ad   : > { %v2034_v9 = vpack.c.bf16 %v1258_v7, %v1257_v4 }
 0x1ae   : > { %vm1127_vm0 = vcmp.ge.f32.partialorder %v1014_v10, 0.0  ;;  %v1192_v12 = vmul.f32 %v2512_v14, %v1014_v10  ;;  %v1287_v18 = vsel %vm1158_vm1, %v1092_v13, %v1223_v5 }
 0x1af   : > { %2126 = vst [vmem:[%s2538_s11 + $0x80] sm:$0xff] %v2034_v9   ;;  %v924_v19 = vpop.f32.mrf.mxu2 }
 0x1b0   : > { %v1256_v55 = vsel %vm1127_vm0, %v1014_v10, %v1192_v12  ;;  %v925_v1 = vadd.f32 %v924_v19, %v2505_v6 }
 0x1b1   : > { %v2029_v21 = vpack.c.bf16 %v1256_v55, %v1255_v17 }
 0x1b2   : > { %v1094_v22 = vadd.f32 %v1093_v60, %v925_v1 }
 0x1b3   : > { %2125 = vst [vmem:[%s2538_s11 + $0x78] sm:$0xff] %v2029_v21  }
 0x1b4   : > { %vm1159_vm3 = vcmp.ge.f32.partialorder %v1094_v22, 0.0  ;;  %v1224_v23 = vmul.f32 %v2512_v14, %v1094_v22 }
 0x1b6   : > { %v1288_v6 = vsel %vm1159_vm3, %v1094_v22, %v1224_v23 }
 0x1b7   : > { %v2109_v24 = vpack.c.bf16 %v1288_v6, %v1287_v18 }
 0x1b9   : > { %2141 = vst [vmem:[%s2538_s11 + $0xf8] sm:$0xff] %v2109_v24  }
 0x1ba   : > { %2237 = shalt.err (!%p2234_p5)
}
 0x1bb   : > { %s2291_s8 = smov 64   ;;  %s2292_s9 = smov 4  }
 0x1bc   : > { %2152 = dma.vmem_to_hbm [thread:$0]  (%p2353_p4), %s1432_s15, 4096, %s1434_s26, %s1418_s27, %s2291_s8, %s2291_s8, %s2292_s9  }
 0x1bd PF: > { %p2158_p6 = scmp.ge.s32.totalorder %s2288_s17, 2  ;;  %s1448_s10 = sand.u32 1, %s2268_s12  }
 0x1be   : > { %s1449_s11 = scalar_lea.sflag [#allocation3], %s1448_s10 }
 0x1bf   : > { %p2155_p7 = pnand %p2158_p6, %p2360_p8 }
 0x1c1   : > { %p2156_p9 = pneg %p2155_p7 }
 0x1c3   : > { %2263 = dma.done.wait (%p2156_p9), %s1449_s11, 4096  }
 0x1c4   : > { %2265 = vsyncadd (%p2156_p9), %s1449_s11, 4294963200  ;;  %s16_s17 = sadd.s32 1, %s2288_s17   ;;  %s2850_s12 = smov %s2272_s13 }
 0x1c5   : > { %p13_p10 = scmp.ge.s32.totalorder %s16_s17, 6   ;;  %s2851_s13 = smov %s2276_s14 }
 0x1c6   : > { %s2852_s14 = smov %s2366_s25  ;;  %s2853_s15 = smov %s2284_s16 }
 0x1c7   : > { %s2854_s16 = smov %s2856_s20  ;;  %15 = sbr.rel (!%p13_p10) target bundleno = 4 (0x4), region = 73 }
 0x1cc   :  { %1455 = vsyncpa [#allocation3], 1 }
 0x1cd   :  { %1457 = vsyncpa [#allocation3 + $0x1], 1 }

</bundles_post_ra>
